<compile_context>
chip_gen: v5e
topology: v5e:2x2
jax: 0.10.0
libtpu: 0.0.40
codegen_flags: <defaults>
</compile_context>

<pallas_src>
import jax
import jax.numpy as jnp
from jax.experimental import pallas as pl
from jax.experimental.pallas import tpu as pltpu

# ----------------------------- model configuration ---------------------------
STATE_DIM = 6
CONTROL_DIM = 2
OUTPUT_DIM = 6
RNN_SIZE = 16          # control_rnn_size
RNN_DEPTH = 2          # control_rnn_depth (kernel specialized for depth == 2)
ENCODER_SIZE = 2
ENCODER_DEPTH = 2
DECODER_SIZE = 2
DECODER_DEPTH = 2

X_DNN_OSZ = RNN_DEPTH * RNN_SIZE                    # encoder output (flattened h0)
ENC_HIDDEN = ENCODER_DEPTH * (ENCODER_SIZE * X_DNN_OSZ,)
DEC_HIDDEN = DECODER_DEPTH * (DECODER_SIZE * RNN_SIZE,)

ENC_DIMS = tuple(zip((STATE_DIM,) + ENC_HIDDEN, ENC_HIDDEN + (X_DNN_OSZ,)))
DEC_DIMS = tuple(zip((RNN_SIZE,) + DEC_HIDDEN, DEC_HIDDEN + (OUTPUT_DIM,)))

BATCH = 2
SEQ_LEN = 8
F_RNN = 1 + CONTROL_DIM        # LSTM input width (u + delta)
PADW = 64                      # common pad width for packed weights (>= 4*RNN_SIZE)


# --------------------------- fused forward kernel ----------------------------
def _make_fused_kernel(enc_dims, dec_dims, hidden, seq_len, f_rnn):
    """Kernel args (all VMEM refs):
         seq  (T, B, f_rnn+1)  time-major [u..., rnn-delta, blend-delta]
         x    (B, state_dim)
         lens (B, 1) int32
         W    (n_mat, 64, 64)  zero-padded weight slabs (see pack_params order)
         b    (n_bias, 64)     zero-padded biases
         out  (B, output_dim)
    """
    n_enc, n_dec = len(enc_dims), len(dec_dims)
    H, G, T = hidden, 4 * hidden, seq_len
    # packed slab indices (must match pack_params ordering)
    IW_IH0, IW_HH0, IW_C1 = n_enc, n_enc + 1, n_enc + 2
    IW_DEC = n_enc + 3
    JB_L0, JB_L1 = n_enc, n_enc + 1
    JB_DEC = n_enc + 2

    def kernel(seq_ref, x_ref, len_ref, w_ref, b_ref, out_ref):
        Bsz = x_ref.shape[0]

        def linear(h, wi, bi, fan_in, fan_out, act):
            # Static window load of the true (fan_in, fan_out) block of slab wi.
            w = w_ref[wi, :fan_in, :fan_out]
            b = b_ref[bi:bi + 1, :fan_out]
            h = jnp.dot(h, w, preferred_element_type=jnp.float32) + b
            return jnp.tanh(h) if act else h

        # ---------------- encoder (x_dnn): h0 stays in vregs ----------------
        h = x_ref[...]
        for l, (fi, fo) in enumerate(enc_dims):
            h = linear(h, l, l, fi, fo, act=(l < n_enc - 1))
        h0 = h[:, 0:H]                                  # layer-0 initial hidden
        h1 = h[:, H:2 * H]                              # layer-1 initial hidden
        c0 = jnp.zeros((Bsz, H), jnp.float32)
        c1 = jnp.zeros((Bsz, H), jnp.float32)

        # --------- recurrent weights: slice/broadcast once, outside loop -----
        # w_ih0 keeps one extra zero row (index f_rnn) so the blend-delta lane
        # of `seq` contributes nothing -> no per-step lane slice of the input.
        w_ih0 = w_ref[IW_IH0, :f_rnn + 1, :G]           # (f_rnn+1, 4H)
        w_hh0 = w_ref[IW_HH0, :H, :G]                   # (H, 4H)
        w_c1 = w_ref[IW_C1, :2 * H, :G]                 # (2H, 4H) = [w_ih1; w_hh1]
        b0 = jnp.broadcast_to(b_ref[JB_L0:JB_L0 + 1, :G], (Bsz, G))
        b1 = jnp.broadcast_to(b_ref[JB_L1:JB_L1 + 1, :G], (Bsz, G))

        lens = len_ref[...]                             # (B, 1); 1 <= lens <= T

        # Time-major sequence: leading-dim indexing is a plain tile access.
        seq_t = [seq_ref[t] for t in range(T)]          # each (B, f_rnn+1)
        # Hoisted layer-0 input projection: independent of h, so all T dots are
        # issued before the recurrence (off the serial chain), bias folded in.
        xp = [jnp.dot(seq_t[t], w_ih0, preferred_element_type=jnp.float32) + b0
              for t in range(T)]

        def cell(gates, c_prev):
            # Gate order (i, f, o, g): one contiguous sigmoid + one tanh.
            sg = jax.nn.sigmoid(gates[:, :3 * H])
            i_g = sg[:, 0 * H:1 * H]
            f_g = sg[:, 1 * H:2 * H]
            o_g = sg[:, 2 * H:3 * H]
            g_g = jnp.tanh(gates[:, 3 * H:4 * H])
            c_n = f_g * c_prev + i_g * g_g
            h_n = o_g * jnp.tanh(c_n)
            return h_n, c_n

        enc_last = jnp.zeros((Bsz, H), jnp.float32)

        # -------- 2-layer LSTM, fully unrolled, wavefront over layers --------
        for t in range(T):                              # static unroll
            d_t = seq_t[t][:, f_rnn:f_rnn + 1]          # blend delta (B, 1)

            # layer 0: only the recurrent matmul remains on the chain
            g0 = xp[t] + jnp.dot(h0, w_hh0, preferred_element_type=jnp.float32)
            h0_new, c0 = cell(g0, c0)

            # layer 1: single fused [x ; h] matmul
            xin1 = jnp.concatenate([h0_new, h1], axis=1)    # (B, 2H)
            g1 = jnp.dot(xin1, w_c1, preferred_element_type=jnp.float32) + b1
            h1_new, c1 = cell(g1, c1)

            # encoded_controls[t] = (1-d)*h_shift[t] + d*h[t]
            # h_shift[t] == previous top-layer h (== h0[-1] at t == 0).
            enc_t = (1.0 - d_t) * h1 + d_t * h1_new
            # Capture only the value at t == lengths[b]-1 (packed-seq gather).
            enc_last = jnp.where(lens == (t + 1), enc_t, enc_last)

            h0, h1 = h0_new, h1_new

        # ---------------- decoder (u_dnn) -> single HBM store ---------------
        h = enc_last
        for l, (fi, fo) in enumerate(dec_dims):
            h = linear(h, IW_DEC + l, JB_DEC + l, fi, fo, act=(l < n_dec - 1))
        out_ref[...] = h

    return kernel


# ------------------------------ parameter packing -----------------------------
def pack_params(params, padw=PADW):
    """Pack all weights/biases into two pre-padded arrays.

    Slab order: enc layers, lstm w_ih0, lstm w_hh0, [w_ih1; w_hh1], dec layers.
    Bias order: enc biases, lstm b0, lstm b1, dec biases.
    Gate column order is (i, f, o, g) with b = b_ih + b_hh (note for porting a
    trained PyTorch checkpoint, which stores (i, f, g, o)).
    """
    def pad_mat(w):
        r, c = w.shape
        return jnp.pad(w, ((0, padw - r), (0, padw - c)))

    mats = list(params["enc_w"])
    mats.append(params["lstm_wih"][0])
    mats.append(params["lstm_whh"][0])
    mats.append(jnp.concatenate([params["lstm_wih"][1],
                                 params["lstm_whh"][1]], axis=0))
    mats += list(params["dec_w"])

    biases = list(params["enc_b"]) + list(params["lstm_b"]) + list(params["dec_b"])

    W = jnp.stack([pad_mat(w) for w in mats])                       # (n, 64, 64)
    bvec = jnp.concatenate(
        [jnp.pad(b, ((0, 0), (0, padw - b.shape[1]))) for b in biases], axis=0)
    return {"W": W, "b": bvec}


# --------------------------------- wrapper ------------------------------------
@jax.jit
def causal_flow_forward(w_packed, b_packed, x, rnn_input, deltas, lengths):
    B, T, _ = rnn_input.shape
    # Time-major layout so the kernel indexes the leading (untiled) dim per step;
    # blend-delta is appended as an extra lane (cuts the per-call DMA count).
    seq = jnp.transpose(jnp.concatenate([rnn_input, deltas], axis=-1), (1, 0, 2))
    lens2d = lengths.reshape(B, 1).astype(jnp.int32)

    kernel = _make_fused_kernel(ENC_DIMS, DEC_DIMS, RNN_SIZE, T, F_RNN)
    vmem = pl.BlockSpec(memory_space=pltpu.MemorySpace.VMEM)
    return pl.pallas_call(
        kernel,
        out_shape=jax.ShapeDtypeStruct((B, OUTPUT_DIM), jnp.float32),
        in_specs=[vmem] * 5,
        out_specs=vmem,
    )(seq, x, lens2d, w_packed, b_packed)


# --------------------------- pure-JAX reference --------------------------------
def _mlp_ref(x, ws, bs):
    h = x
    for l, (w, b) in enumerate(zip(ws, bs)):
        h = h @ w + b
        if l < len(ws) - 1:
            h = jnp.tanh(h)
    return h


def _lstm_layer_ref(x_seq_tm, h0, w_ih, w_hh, b):
    H = h0.shape[1]

    def step(carry, x_t):
        h, c = carry
        g = x_t @ w_ih + h @ w_hh + b
        # gate order (i, f, o, g) -- matches the kernel / init packing
        i = jax.nn.sigmoid(g[:, 0 * H:1 * H])
        f = jax.nn.sigmoid(g[:, 1 * H:2 * H])
        o = jax.nn.sigmoid(g[:, 2 * H:3 * H])
        gg = jnp.tanh(g[:, 3 * H:4 * H])
        c = f * c + i * gg
        h = o * jnp.tanh(c)
        return (h, c), h

    (_, _), hs = jax.lax.scan(step, (h0, jnp.zeros_like(h0)), x_seq_tm)
    return hs


def causal_flow_ref(params, x, rnn_input, deltas, lengths):
    B = x.shape[0]
    h0_flat = _mlp_ref(x, params["enc_w"], params["enc_b"])
    h0_layers = jnp.stack(jnp.split(h0_flat, RNN_DEPTH, axis=1), axis=0)
    x_in = jnp.transpose(rnn_input, (1, 0, 2))                        # (T, B, F)
    for l in range(RNN_DEPTH):
        x_in = _lstm_layer_ref(x_in, h0_layers[l], params["lstm_wih"][l],
                               params["lstm_whh"][l], params["lstm_b"][l])
    h = jnp.transpose(x_in, (1, 0, 2))                                # (B, T, H)
    h_shift = jnp.roll(h, shift=1, axis=1)
    h_shift = h_shift.at[:, 0, :].set(h0_layers[-1])
    enc = (1.0 - deltas) * h_shift + deltas * h
    enc_last = enc[jnp.arange(B), lengths - 1, :]
    return _mlp_ref(enc_last, params["dec_w"], params["dec_b"])


# ------------------------------ parameter init ---------------------------------
def _init_linear(key, fan_in, fan_out):
    kw, kb = jax.random.split(key)
    bound = 1.0 / (fan_in ** 0.5)
    w = jax.random.uniform(kw, (fan_in, fan_out), jnp.float32, -bound, bound)
    b = jax.random.uniform(kb, (1, fan_out), jnp.float32, -bound, bound)
    return w, b


def _init_ffnet(key, in_size, hidden, out_size):
    sizes = (in_size,) + tuple(hidden) + (out_size,)
    ws, bs = [], []
    keys = jax.random.split(key, len(sizes) - 1)
    for k, isz, osz in zip(keys, sizes[:-1], sizes[1:]):
        w, b = _init_linear(k, isz, osz)
        ws.append(w)
        bs.append(b)
    return ws, bs


def _init_lstm_layer(key, in_size, hidden):
    # Layout: w_ih (I, 4H), w_hh (H, 4H), b (1, 4H); gate order (i, f, o, g).
    k1, k2, k3 = jax.random.split(key, 3)
    bound = 1.0 / (hidden ** 0.5)
    w_ih = jax.random.uniform(k1, (in_size, 4 * hidden), jnp.float32, -bound, bound)
    w_hh = jax.random.uniform(k2, (hidden, 4 * hidden), jnp.float32, -bound, bound)
    b = jax.random.uniform(k3, (1, 4 * hidden), jnp.float32, -bound, bound)
    return w_ih, w_hh, b


def init_params(key):
    k_enc, k_dec, k_lstm = jax.random.split(key, 3)
    enc_w, enc_b = _init_ffnet(k_enc, STATE_DIM, ENC_HIDDEN, X_DNN_OSZ)
    dec_w, dec_b = _init_ffnet(k_dec, RNN_SIZE, DEC_HIDDEN, OUTPUT_DIM)
    lstm_wih, lstm_whh, lstm_b = [], [], []
    lkeys = jax.random.split(k_lstm, RNN_DEPTH)
    for l in range(RNN_DEPTH):
        in_size = F_RNN if l == 0 else RNN_SIZE
        w_ih, w_hh, b = _init_lstm_layer(lkeys[l], in_size, RNN_SIZE)
        lstm_wih.append(w_ih)
        lstm_whh.append(w_hh)
        lstm_b.append(b)
    return {"enc_w": enc_w, "enc_b": enc_b,
            "dec_w": dec_w, "dec_b": dec_b,
            "lstm_wih": lstm_wih, "lstm_whh": lstm_whh, "lstm_b": lstm_b}


# ------------------------------------ main --------------------------------------
if __name__ == "__main__":
    key = jax.random.PRNGKey(0)
    k_p, k_x, k_u, k_d = jax.random.split(key, 4)

    params = init_params(k_p)
    packed = pack_params(params)   # one-time packing, outside the forward path

    x = jax.random.normal(k_x, (BATCH, STATE_DIM), jnp.float32)
    u = jax.random.normal(k_u, (BATCH, SEQ_LEN, CONTROL_DIM), jnp.float32)
    deltas = jax.random.uniform(k_d, (BATCH, SEQ_LEN, 1), jnp.float32)
    rnn_input = jnp.concatenate([u, deltas], axis=-1)       # padded u_deltas (B, T, 1+ctrl)
    lengths = jnp.array([SEQ_LEN, SEQ_LEN - 3], jnp.int32)  # packed-sequence lengths
    # PHI / locations are unused in this (no-POD / no-trunk / no-fourier) configuration.
    PHI = jax.random.normal(key, (STATE_DIM, 4), jnp.float32)       # noqa: F841
    locations = jnp.linspace(0.0, 1.0, STATE_DIM)                   # noqa: F841

    out = causal_flow_forward(packed["W"], packed["b"], x, rnn_input, deltas, lengths)
    out = jax.block_until_ready(out)
    assert out.shape == (BATCH, OUTPUT_DIM)

    ref = causal_flow_ref(params, x, rnn_input, deltas, lengths)
    assert jnp.max(jnp.abs(out - ref)) < 1e-4, "Pallas output mismatch vs JAX reference"

    print("KERNEL_OK")
</pallas_src>

<mosaic_0001>
module attributes {stable_mosaic.version = 11 : i64} {
  func.func @kernel(%arg0: memref<8x2x4xf32, #tpu.memory_space<vmem>>, %arg1: memref<2x6xf32, #tpu.memory_space<vmem>>, %arg2: memref<2x1xi32, #tpu.memory_space<vmem>>, %arg3: memref<9x64x64xf32, #tpu.memory_space<vmem>>, %arg4: memref<8x64xf32, #tpu.memory_space<vmem>>, %arg5: memref<2x6xf32, #tpu.memory_space<vmem>>) attributes {dimension_semantics = [], scalar_prefetch = 0 : i64, scratch_operands = 0 : i64, tpu.core_type = #tpu.core_type<tc>} {
    %c0 = arith.constant 0 : index
    %c0_0 = arith.constant 0 : index
    %0 = vector.load %arg1[%c0, %c0_0] : memref<2x6xf32, #tpu.memory_space<vmem>>, vector<2x6xf32>
    %c0_1 = arith.constant 0 : index
    %c0_2 = arith.constant 0 : index
    %c0_3 = arith.constant 0 : index
    %1 = vector.load %arg3[%c0_1, %c0_2, %c0_3] : memref<9x64x64xf32, #tpu.memory_space<vmem>>, vector<1x6x64xf32>
    %2 = vector.shape_cast %1 : vector<1x6x64xf32> to vector<6x64xf32>
    %c0_4 = arith.constant 0 : index
    %c0_5 = arith.constant 0 : index
    %3 = vector.load %arg4[%c0_4, %c0_5] : memref<8x64xf32, #tpu.memory_space<vmem>>, vector<1x64xf32>
    %cst = arith.constant dense<0.000000e+00> : vector<2x64xf32>
    %4 = tpu.matmul %0, %2, %cst {dimension_numbers = #tpu.dot_dimension_numbers<[1], [0], [0], [1], [0, 0, 1, 1], [], []>} : vector<2x6xf32>, vector<6x64xf32>, vector<2x64xf32> -> vector<2x64xf32>
    %5 = vector.broadcast %3 : vector<1x64xf32> to vector<2x64xf32>
    %6 = arith.addf %4, %5 : vector<2x64xf32>
    %7 = math.tanh %6 : vector<2x64xf32>
    %c1 = arith.constant 1 : index
    %c0_6 = arith.constant 0 : index
    %c0_7 = arith.constant 0 : index
    %8 = vector.load %arg3[%c1, %c0_6, %c0_7] : memref<9x64x64xf32, #tpu.memory_space<vmem>>, vector<1x64x64xf32>
    %9 = vector.shape_cast %8 : vector<1x64x64xf32> to vector<64x64xf32>
    %c1_8 = arith.constant 1 : index
    %c0_9 = arith.constant 0 : index
    %10 = vector.load %arg4[%c1_8, %c0_9] : memref<8x64xf32, #tpu.memory_space<vmem>>, vector<1x64xf32>
    %cst_10 = arith.constant dense<0.000000e+00> : vector<2x64xf32>
    %11 = tpu.matmul %7, %9, %cst_10 {dimension_numbers = #tpu.dot_dimension_numbers<[1], [0], [0], [1], [0, 0, 1, 1], [], []>} : vector<2x64xf32>, vector<64x64xf32>, vector<2x64xf32> -> vector<2x64xf32>
    %12 = vector.broadcast %10 : vector<1x64xf32> to vector<2x64xf32>
    %13 = arith.addf %11, %12 : vector<2x64xf32>
    %14 = math.tanh %13 : vector<2x64xf32>
    %c2 = arith.constant 2 : index
    %c0_11 = arith.constant 0 : index
    %c0_12 = arith.constant 0 : index
    %15 = vector.load %arg3[%c2, %c0_11, %c0_12] : memref<9x64x64xf32, #tpu.memory_space<vmem>>, vector<1x64x32xf32>
    %16 = vector.shape_cast %15 : vector<1x64x32xf32> to vector<64x32xf32>
    %c2_13 = arith.constant 2 : index
    %c0_14 = arith.constant 0 : index
    %17 = vector.load %arg4[%c2_13, %c0_14] : memref<8x64xf32, #tpu.memory_space<vmem>>, vector<1x32xf32>
    %cst_15 = arith.constant dense<0.000000e+00> : vector<2x32xf32>
    %18 = tpu.matmul %14, %16, %cst_15 {dimension_numbers = #tpu.dot_dimension_numbers<[1], [0], [0], [1], [0, 0, 1, 1], [], []>} : vector<2x64xf32>, vector<64x32xf32>, vector<2x32xf32> -> vector<2x32xf32>
    %19 = vector.broadcast %17 : vector<1x32xf32> to vector<2x32xf32>
    %20 = arith.addf %18, %19 : vector<2x32xf32>
    %21 = vector.extract_strided_slice %20 {offsets = [0, 0], sizes = [2, 16], strides = [1, 1]} : vector<2x32xf32> to vector<2x16xf32>
    %22 = vector.extract_strided_slice %20 {offsets = [0, 16], sizes = [2, 16], strides = [1, 1]} : vector<2x32xf32> to vector<2x16xf32>
    %cst_16 = arith.constant 0.000000e+00 : f32
    %23 = vector.broadcast %cst_16 : f32 to vector<2x16xf32>
    %cst_17 = arith.constant 0.000000e+00 : f32
    %24 = vector.broadcast %cst_17 : f32 to vector<2x16xf32>
    %c3 = arith.constant 3 : index
    %c0_18 = arith.constant 0 : index
    %c0_19 = arith.constant 0 : index
    %25 = vector.load %arg3[%c3, %c0_18, %c0_19] : memref<9x64x64xf32, #tpu.memory_space<vmem>>, vector<1x4x64xf32>
    %26 = vector.shape_cast %25 : vector<1x4x64xf32> to vector<4x64xf32>
    %c4 = arith.constant 4 : index
    %c0_20 = arith.constant 0 : index
    %c0_21 = arith.constant 0 : index
    %27 = vector.load %arg3[%c4, %c0_20, %c0_21] : memref<9x64x64xf32, #tpu.memory_space<vmem>>, vector<1x16x64xf32>
    %28 = vector.shape_cast %27 : vector<1x16x64xf32> to vector<16x64xf32>
    %c5 = arith.constant 5 : index
    %c0_22 = arith.constant 0 : index
    %c0_23 = arith.constant 0 : index
    %29 = vector.load %arg3[%c5, %c0_22, %c0_23] : memref<9x64x64xf32, #tpu.memory_space<vmem>>, vector<1x32x64xf32>
    %30 = vector.shape_cast %29 : vector<1x32x64xf32> to vector<32x64xf32>
    %c3_24 = arith.constant 3 : index
    %c0_25 = arith.constant 0 : index
    %31 = vector.load %arg4[%c3_24, %c0_25] : memref<8x64xf32, #tpu.memory_space<vmem>>, vector<1x64xf32>
    %32 = vector.shape_cast %31 : vector<1x64xf32> to vector<1x64xf32>
    %33 = vector.broadcast %32 : vector<1x64xf32> to vector<2x64xf32>
    %c4_26 = arith.constant 4 : index
    %c0_27 = arith.constant 0 : index
    %34 = vector.load %arg4[%c4_26, %c0_27] : memref<8x64xf32, #tpu.memory_space<vmem>>, vector<1x64xf32>
    %35 = vector.shape_cast %34 : vector<1x64xf32> to vector<1x64xf32>
    %36 = vector.broadcast %35 : vector<1x64xf32> to vector<2x64xf32>
    %c0_28 = arith.constant 0 : index
    %c0_29 = arith.constant 0 : index
    %37 = vector.load %arg2[%c0_28, %c0_29] : memref<2x1xi32, #tpu.memory_space<vmem>>, vector<2x1xi32>
    %c0_30 = arith.constant 0 : index
    %c0_31 = arith.constant 0 : index
    %c0_32 = arith.constant 0 : index
    %38 = vector.load %arg0[%c0_30, %c0_31, %c0_32] : memref<8x2x4xf32, #tpu.memory_space<vmem>>, vector<1x2x4xf32>
    %39 = vector.shape_cast %38 : vector<1x2x4xf32> to vector<2x4xf32>
    %c1_33 = arith.constant 1 : index
    %c0_34 = arith.constant 0 : index
    %c0_35 = arith.constant 0 : index
    %40 = vector.load %arg0[%c1_33, %c0_34, %c0_35] : memref<8x2x4xf32, #tpu.memory_space<vmem>>, vector<1x2x4xf32>
    %41 = vector.shape_cast %40 : vector<1x2x4xf32> to vector<2x4xf32>
    %c2_36 = arith.constant 2 : index
    %c0_37 = arith.constant 0 : index
    %c0_38 = arith.constant 0 : index
    %42 = vector.load %arg0[%c2_36, %c0_37, %c0_38] : memref<8x2x4xf32, #tpu.memory_space<vmem>>, vector<1x2x4xf32>
    %43 = vector.shape_cast %42 : vector<1x2x4xf32> to vector<2x4xf32>
    %c3_39 = arith.constant 3 : index
    %c0_40 = arith.constant 0 : index
    %c0_41 = arith.constant 0 : index
    %44 = vector.load %arg0[%c3_39, %c0_40, %c0_41] : memref<8x2x4xf32, #tpu.memory_space<vmem>>, vector<1x2x4xf32>
    %45 = vector.shape_cast %44 : vector<1x2x4xf32> to vector<2x4xf32>
    %c4_42 = arith.constant 4 : index
    %c0_43 = arith.constant 0 : index
    %c0_44 = arith.constant 0 : index
    %46 = vector.load %arg0[%c4_42, %c0_43, %c0_44] : memref<8x2x4xf32, #tpu.memory_space<vmem>>, vector<1x2x4xf32>
    %47 = vector.shape_cast %46 : vector<1x2x4xf32> to vector<2x4xf32>
    %c5_45 = arith.constant 5 : index
    %c0_46 = arith.constant 0 : index
    %c0_47 = arith.constant 0 : index
    %48 = vector.load %arg0[%c5_45, %c0_46, %c0_47] : memref<8x2x4xf32, #tpu.memory_space<vmem>>, vector<1x2x4xf32>
    %49 = vector.shape_cast %48 : vector<1x2x4xf32> to vector<2x4xf32>
    %c6 = arith.constant 6 : index
    %c0_48 = arith.constant 0 : index
    %c0_49 = arith.constant 0 : index
    %50 = vector.load %arg0[%c6, %c0_48, %c0_49] : memref<8x2x4xf32, #tpu.memory_space<vmem>>, vector<1x2x4xf32>
    %51 = vector.shape_cast %50 : vector<1x2x4xf32> to vector<2x4xf32>
    %c7 = arith.constant 7 : index
    %c0_50 = arith.constant 0 : index
    %c0_51 = arith.constant 0 : index
    %52 = vector.load %arg0[%c7, %c0_50, %c0_51] : memref<8x2x4xf32, #tpu.memory_space<vmem>>, vector<1x2x4xf32>
    %53 = vector.shape_cast %52 : vector<1x2x4xf32> to vector<2x4xf32>
    %cst_52 = arith.constant dense<0.000000e+00> : vector<2x64xf32>
    %54 = tpu.matmul %39, %26, %cst_52 {dimension_numbers = #tpu.dot_dimension_numbers<[1], [0], [0], [1], [0, 0, 1, 1], [], []>} : vector<2x4xf32>, vector<4x64xf32>, vector<2x64xf32> -> vector<2x64xf32>
    %55 = arith.addf %54, %33 : vector<2x64xf32>
    %cst_53 = arith.constant dense<0.000000e+00> : vector<2x64xf32>
    %56 = tpu.matmul %41, %26, %cst_53 {dimension_numbers = #tpu.dot_dimension_numbers<[1], [0], [0], [1], [0, 0, 1, 1], [], []>} : vector<2x4xf32>, vector<4x64xf32>, vector<2x64xf32> -> vector<2x64xf32>
    %57 = arith.addf %56, %33 : vector<2x64xf32>
    %cst_54 = arith.constant dense<0.000000e+00> : vector<2x64xf32>
    %58 = tpu.matmul %43, %26, %cst_54 {dimension_numbers = #tpu.dot_dimension_numbers<[1], [0], [0], [1], [0, 0, 1, 1], [], []>} : vector<2x4xf32>, vector<4x64xf32>, vector<2x64xf32> -> vector<2x64xf32>
    %59 = arith.addf %58, %33 : vector<2x64xf32>
    %cst_55 = arith.constant dense<0.000000e+00> : vector<2x64xf32>
    %60 = tpu.matmul %45, %26, %cst_55 {dimension_numbers = #tpu.dot_dimension_numbers<[1], [0], [0], [1], [0, 0, 1, 1], [], []>} : vector<2x4xf32>, vector<4x64xf32>, vector<2x64xf32> -> vector<2x64xf32>
    %61 = arith.addf %60, %33 : vector<2x64xf32>
    %cst_56 = arith.constant dense<0.000000e+00> : vector<2x64xf32>
    %62 = tpu.matmul %47, %26, %cst_56 {dimension_numbers = #tpu.dot_dimension_numbers<[1], [0], [0], [1], [0, 0, 1, 1], [], []>} : vector<2x4xf32>, vector<4x64xf32>, vector<2x64xf32> -> vector<2x64xf32>
    %63 = arith.addf %62, %33 : vector<2x64xf32>
    %cst_57 = arith.constant dense<0.000000e+00> : vector<2x64xf32>
    %64 = tpu.matmul %49, %26, %cst_57 {dimension_numbers = #tpu.dot_dimension_numbers<[1], [0], [0], [1], [0, 0, 1, 1], [], []>} : vector<2x4xf32>, vector<4x64xf32>, vector<2x64xf32> -> vector<2x64xf32>
    %65 = arith.addf %64, %33 : vector<2x64xf32>
    %cst_58 = arith.constant dense<0.000000e+00> : vector<2x64xf32>
    %66 = tpu.matmul %51, %26, %cst_58 {dimension_numbers = #tpu.dot_dimension_numbers<[1], [0], [0], [1], [0, 0, 1, 1], [], []>} : vector<2x4xf32>, vector<4x64xf32>, vector<2x64xf32> -> vector<2x64xf32>
    %67 = arith.addf %66, %33 : vector<2x64xf32>
    %cst_59 = arith.constant dense<0.000000e+00> : vector<2x64xf32>
    %68 = tpu.matmul %53, %26, %cst_59 {dimension_numbers = #tpu.dot_dimension_numbers<[1], [0], [0], [1], [0, 0, 1, 1], [], []>} : vector<2x4xf32>, vector<4x64xf32>, vector<2x64xf32> -> vector<2x64xf32>
    %69 = arith.addf %68, %33 : vector<2x64xf32>
    %cst_60 = arith.constant 0.000000e+00 : f32
    %70 = vector.broadcast %cst_60 : f32 to vector<2x16xf32>
    %71 = vector.extract_strided_slice %39 {offsets = [0, 3], sizes = [2, 1], strides = [1, 1]} : vector<2x4xf32> to vector<2x1xf32>
    %cst_61 = arith.constant dense<0.000000e+00> : vector<2x64xf32>
    %72 = tpu.matmul %21, %28, %cst_61 {dimension_numbers = #tpu.dot_dimension_numbers<[1], [0], [0], [1], [0, 0, 1, 1], [], []>} : vector<2x16xf32>, vector<16x64xf32>, vector<2x64xf32> -> vector<2x64xf32>
    %73 = arith.addf %55, %72 : vector<2x64xf32>
    %74 = vector.extract_strided_slice %73 {offsets = [0, 0], sizes = [2, 48], strides = [1, 1]} : vector<2x64xf32> to vector<2x48xf32>
    %75 = arith.negf %74 : vector<2x48xf32>
    %76 = math.exp %75 : vector<2x48xf32>
    %cst_62 = arith.constant 1.000000e+00 : f32
    %77 = vector.broadcast %cst_62 : f32 to vector<2x48xf32>
    %78 = arith.addf %77, %76 : vector<2x48xf32>
    %79 = arith.divf %77, %78 : vector<2x48xf32>
    %80 = vector.extract_strided_slice %79 {offsets = [0, 0], sizes = [2, 16], strides = [1, 1]} : vector<2x48xf32> to vector<2x16xf32>
    %81 = vector.extract_strided_slice %79 {offsets = [0, 16], sizes = [2, 16], strides = [1, 1]} : vector<2x48xf32> to vector<2x16xf32>
    %82 = vector.extract_strided_slice %79 {offsets = [0, 32], sizes = [2, 16], strides = [1, 1]} : vector<2x48xf32> to vector<2x16xf32>
    %83 = vector.extract_strided_slice %73 {offsets = [0, 48], sizes = [2, 16], strides = [1, 1]} : vector<2x64xf32> to vector<2x16xf32>
    %84 = math.tanh %83 : vector<2x16xf32>
    %85 = arith.mulf %81, %23 : vector<2x16xf32>
    %86 = arith.mulf %80, %84 : vector<2x16xf32>
    %87 = arith.addf %85, %86 : vector<2x16xf32>
    %88 = math.tanh %87 : vector<2x16xf32>
    %89 = arith.mulf %82, %88 : vector<2x16xf32>
    %90 = tpu.concatenate %89, %22 in 1 : vector<2x16xf32>, vector<2x16xf32> -> vector<2x32xf32>
    %cst_63 = arith.constant dense<0.000000e+00> : vector<2x64xf32>
    %91 = tpu.matmul %90, %30, %cst_63 {dimension_numbers = #tpu.dot_dimension_numbers<[1], [0], [0], [1], [0, 0, 1, 1], [], []>} : vector<2x32xf32>, vector<32x64xf32>, vector<2x64xf32> -> vector<2x64xf32>
    %92 = arith.addf %91, %36 : vector<2x64xf32>
    %93 = vector.extract_strided_slice %92 {offsets = [0, 0], sizes = [2, 48], strides = [1, 1]} : vector<2x64xf32> to vector<2x48xf32>
    %94 = arith.negf %93 : vector<2x48xf32>
    %95 = math.exp %94 : vector<2x48xf32>
    %cst_64 = arith.constant 1.000000e+00 : f32
    %96 = vector.broadcast %cst_64 : f32 to vector<2x48xf32>
    %97 = arith.addf %96, %95 : vector<2x48xf32>
    %98 = arith.divf %96, %97 : vector<2x48xf32>
    %99 = vector.extract_strided_slice %98 {offsets = [0, 0], sizes = [2, 16], strides = [1, 1]} : vector<2x48xf32> to vector<2x16xf32>
    %100 = vector.extract_strided_slice %98 {offsets = [0, 16], sizes = [2, 16], strides = [1, 1]} : vector<2x48xf32> to vector<2x16xf32>
    %101 = vector.extract_strided_slice %98 {offsets = [0, 32], sizes = [2, 16], strides = [1, 1]} : vector<2x48xf32> to vector<2x16xf32>
    %102 = vector.extract_strided_slice %92 {offsets = [0, 48], sizes = [2, 16], strides = [1, 1]} : vector<2x64xf32> to vector<2x16xf32>
    %103 = math.tanh %102 : vector<2x16xf32>
    %104 = arith.mulf %100, %24 : vector<2x16xf32>
    %105 = arith.mulf %99, %103 : vector<2x16xf32>
    %106 = arith.addf %104, %105 : vector<2x16xf32>
    %107 = math.tanh %106 : vector<2x16xf32>
    %108 = arith.mulf %101, %107 : vector<2x16xf32>
    %cst_65 = arith.constant 1.000000e+00 : f32
    %109 = vector.broadcast %cst_65 : f32 to vector<2x1xf32>
    %110 = arith.subf %109, %71 : vector<2x1xf32>
    %111 = vector.broadcast %110 : vector<2x1xf32> to vector<2x16xf32>
    %112 = arith.mulf %111, %22 : vector<2x16xf32>
    %113 = vector.broadcast %71 : vector<2x1xf32> to vector<2x16xf32>
    %114 = arith.mulf %113, %108 : vector<2x16xf32>
    %115 = arith.addf %112, %114 : vector<2x16xf32>
    %c1_i32 = arith.constant 1 : i32
    %116 = vector.broadcast %c1_i32 : i32 to vector<2x1xi32>
    %117 = arith.cmpi eq, %37, %116 : vector<2x1xi32>
    %118 = vector.shape_cast %117 : vector<2x1xi1> to vector<2x1xi1>
    %119 = vector.broadcast %118 : vector<2x1xi1> to vector<2x16xi1>
    %120 = arith.select %119, %115, %70 : vector<2x16xi1>, vector<2x16xf32>
    %121 = vector.extract_strided_slice %41 {offsets = [0, 3], sizes = [2, 1], strides = [1, 1]} : vector<2x4xf32> to vector<2x1xf32>
    %cst_66 = arith.constant dense<0.000000e+00> : vector<2x64xf32>
    %122 = tpu.matmul %89, %28, %cst_66 {dimension_numbers = #tpu.dot_dimension_numbers<[1], [0], [0], [1], [0, 0, 1, 1], [], []>} : vector<2x16xf32>, vector<16x64xf32>, vector<2x64xf32> -> vector<2x64xf32>
    %123 = arith.addf %57, %122 : vector<2x64xf32>
    %124 = vector.extract_strided_slice %123 {offsets = [0, 0], sizes = [2, 48], strides = [1, 1]} : vector<2x64xf32> to vector<2x48xf32>
    %125 = arith.negf %124 : vector<2x48xf32>
    %126 = math.exp %125 : vector<2x48xf32>
    %cst_67 = arith.constant 1.000000e+00 : f32
    %127 = vector.broadcast %cst_67 : f32 to vector<2x48xf32>
    %128 = arith.addf %127, %126 : vector<2x48xf32>
    %129 = arith.divf %127, %128 : vector<2x48xf32>
    %130 = vector.extract_strided_slice %129 {offsets = [0, 0], sizes = [2, 16], strides = [1, 1]} : vector<2x48xf32> to vector<2x16xf32>
    %131 = vector.extract_strided_slice %129 {offsets = [0, 16], sizes = [2, 16], strides = [1, 1]} : vector<2x48xf32> to vector<2x16xf32>
    %132 = vector.extract_strided_slice %129 {offsets = [0, 32], sizes = [2, 16], strides = [1, 1]} : vector<2x48xf32> to vector<2x16xf32>
    %133 = vector.extract_strided_slice %123 {offsets = [0, 48], sizes = [2, 16], strides = [1, 1]} : vector<2x64xf32> to vector<2x16xf32>
    %134 = math.tanh %133 : vector<2x16xf32>
    %135 = arith.mulf %131, %87 : vector<2x16xf32>
    %136 = arith.mulf %130, %134 : vector<2x16xf32>
    %137 = arith.addf %135, %136 : vector<2x16xf32>
    %138 = math.tanh %137 : vector<2x16xf32>
    %139 = arith.mulf %132, %138 : vector<2x16xf32>
    %140 = tpu.concatenate %139, %108 in 1 : vector<2x16xf32>, vector<2x16xf32> -> vector<2x32xf32>
    %cst_68 = arith.constant dense<0.000000e+00> : vector<2x64xf32>
    %141 = tpu.matmul %140, %30, %cst_68 {dimension_numbers = #tpu.dot_dimension_numbers<[1], [0], [0], [1], [0, 0, 1, 1], [], []>} : vector<2x32xf32>, vector<32x64xf32>, vector<2x64xf32> -> vector<2x64xf32>
    %142 = arith.addf %141, %36 : vector<2x64xf32>
    %143 = vector.extract_strided_slice %142 {offsets = [0, 0], sizes = [2, 48], strides = [1, 1]} : vector<2x64xf32> to vector<2x48xf32>
    %144 = arith.negf %143 : vector<2x48xf32>
    %145 = math.exp %144 : vector<2x48xf32>
    %cst_69 = arith.constant 1.000000e+00 : f32
    %146 = vector.broadcast %cst_69 : f32 to vector<2x48xf32>
    %147 = arith.addf %146, %145 : vector<2x48xf32>
    %148 = arith.divf %146, %147 : vector<2x48xf32>
    %149 = vector.extract_strided_slice %148 {offsets = [0, 0], sizes = [2, 16], strides = [1, 1]} : vector<2x48xf32> to vector<2x16xf32>
    %150 = vector.extract_strided_slice %148 {offsets = [0, 16], sizes = [2, 16], strides = [1, 1]} : vector<2x48xf32> to vector<2x16xf32>
    %151 = vector.extract_strided_slice %148 {offsets = [0, 32], sizes = [2, 16], strides = [1, 1]} : vector<2x48xf32> to vector<2x16xf32>
    %152 = vector.extract_strided_slice %142 {offsets = [0, 48], sizes = [2, 16], strides = [1, 1]} : vector<2x64xf32> to vector<2x16xf32>
    %153 = math.tanh %152 : vector<2x16xf32>
    %154 = arith.mulf %150, %106 : vector<2x16xf32>
    %155 = arith.mulf %149, %153 : vector<2x16xf32>
    %156 = arith.addf %154, %155 : vector<2x16xf32>
    %157 = math.tanh %156 : vector<2x16xf32>
    %158 = arith.mulf %151, %157 : vector<2x16xf32>
    %cst_70 = arith.constant 1.000000e+00 : f32
    %159 = vector.broadcast %cst_70 : f32 to vector<2x1xf32>
    %160 = arith.subf %159, %121 : vector<2x1xf32>
    %161 = vector.broadcast %160 : vector<2x1xf32> to vector<2x16xf32>
    %162 = arith.mulf %161, %108 : vector<2x16xf32>
    %163 = vector.broadcast %121 : vector<2x1xf32> to vector<2x16xf32>
    %164 = arith.mulf %163, %158 : vector<2x16xf32>
    %165 = arith.addf %162, %164 : vector<2x16xf32>
    %c2_i32 = arith.constant 2 : i32
    %166 = vector.broadcast %c2_i32 : i32 to vector<2x1xi32>
    %167 = arith.cmpi eq, %37, %166 : vector<2x1xi32>
    %168 = vector.shape_cast %167 : vector<2x1xi1> to vector<2x1xi1>
    %169 = vector.broadcast %168 : vector<2x1xi1> to vector<2x16xi1>
    %170 = arith.select %169, %165, %120 : vector<2x16xi1>, vector<2x16xf32>
    %171 = vector.extract_strided_slice %43 {offsets = [0, 3], sizes = [2, 1], strides = [1, 1]} : vector<2x4xf32> to vector<2x1xf32>
    %cst_71 = arith.constant dense<0.000000e+00> : vector<2x64xf32>
    %172 = tpu.matmul %139, %28, %cst_71 {dimension_numbers = #tpu.dot_dimension_numbers<[1], [0], [0], [1], [0, 0, 1, 1], [], []>} : vector<2x16xf32>, vector<16x64xf32>, vector<2x64xf32> -> vector<2x64xf32>
    %173 = arith.addf %59, %172 : vector<2x64xf32>
    %174 = vector.extract_strided_slice %173 {offsets = [0, 0], sizes = [2, 48], strides = [1, 1]} : vector<2x64xf32> to vector<2x48xf32>
    %175 = arith.negf %174 : vector<2x48xf32>
    %176 = math.exp %175 : vector<2x48xf32>
    %cst_72 = arith.constant 1.000000e+00 : f32
    %177 = vector.broadcast %cst_72 : f32 to vector<2x48xf32>
    %178 = arith.addf %177, %176 : vector<2x48xf32>
    %179 = arith.divf %177, %178 : vector<2x48xf32>
    %180 = vector.extract_strided_slice %179 {offsets = [0, 0], sizes = [2, 16], strides = [1, 1]} : vector<2x48xf32> to vector<2x16xf32>
    %181 = vector.extract_strided_slice %179 {offsets = [0, 16], sizes = [2, 16], strides = [1, 1]} : vector<2x48xf32> to vector<2x16xf32>
    %182 = vector.extract_strided_slice %179 {offsets = [0, 32], sizes = [2, 16], strides = [1, 1]} : vector<2x48xf32> to vector<2x16xf32>
    %183 = vector.extract_strided_slice %173 {offsets = [0, 48], sizes = [2, 16], strides = [1, 1]} : vector<2x64xf32> to vector<2x16xf32>
    %184 = math.tanh %183 : vector<2x16xf32>
    %185 = arith.mulf %181, %137 : vector<2x16xf32>
    %186 = arith.mulf %180, %184 : vector<2x16xf32>
    %187 = arith.addf %185, %186 : vector<2x16xf32>
    %188 = math.tanh %187 : vector<2x16xf32>
    %189 = arith.mulf %182, %188 : vector<2x16xf32>
    %190 = tpu.concatenate %189, %158 in 1 : vector<2x16xf32>, vector<2x16xf32> -> vector<2x32xf32>
    %cst_73 = arith.constant dense<0.000000e+00> : vector<2x64xf32>
    %191 = tpu.matmul %190, %30, %cst_73 {dimension_numbers = #tpu.dot_dimension_numbers<[1], [0], [0], [1], [0, 0, 1, 1], [], []>} : vector<2x32xf32>, vector<32x64xf32>, vector<2x64xf32> -> vector<2x64xf32>
    %192 = arith.addf %191, %36 : vector<2x64xf32>
    %193 = vector.extract_strided_slice %192 {offsets = [0, 0], sizes = [2, 48], strides = [1, 1]} : vector<2x64xf32> to vector<2x48xf32>
    %194 = arith.negf %193 : vector<2x48xf32>
    %195 = math.exp %194 : vector<2x48xf32>
    %cst_74 = arith.constant 1.000000e+00 : f32
    %196 = vector.broadcast %cst_74 : f32 to vector<2x48xf32>
    %197 = arith.addf %196, %195 : vector<2x48xf32>
    %198 = arith.divf %196, %197 : vector<2x48xf32>
    %199 = vector.extract_strided_slice %198 {offsets = [0, 0], sizes = [2, 16], strides = [1, 1]} : vector<2x48xf32> to vector<2x16xf32>
    %200 = vector.extract_strided_slice %198 {offsets = [0, 16], sizes = [2, 16], strides = [1, 1]} : vector<2x48xf32> to vector<2x16xf32>
    %201 = vector.extract_strided_slice %198 {offsets = [0, 32], sizes = [2, 16], strides = [1, 1]} : vector<2x48xf32> to vector<2x16xf32>
    %202 = vector.extract_strided_slice %192 {offsets = [0, 48], sizes = [2, 16], strides = [1, 1]} : vector<2x64xf32> to vector<2x16xf32>
    %203 = math.tanh %202 : vector<2x16xf32>
    %204 = arith.mulf %200, %156 : vector<2x16xf32>
    %205 = arith.mulf %199, %203 : vector<2x16xf32>
    %206 = arith.addf %204, %205 : vector<2x16xf32>
    %207 = math.tanh %206 : vector<2x16xf32>
    %208 = arith.mulf %201, %207 : vector<2x16xf32>
    %cst_75 = arith.constant 1.000000e+00 : f32
    %209 = vector.broadcast %cst_75 : f32 to vector<2x1xf32>
    %210 = arith.subf %209, %171 : vector<2x1xf32>
    %211 = vector.broadcast %210 : vector<2x1xf32> to vector<2x16xf32>
    %212 = arith.mulf %211, %158 : vector<2x16xf32>
    %213 = vector.broadcast %171 : vector<2x1xf32> to vector<2x16xf32>
    %214 = arith.mulf %213, %208 : vector<2x16xf32>
    %215 = arith.addf %212, %214 : vector<2x16xf32>
    %c3_i32 = arith.constant 3 : i32
    %216 = vector.broadcast %c3_i32 : i32 to vector<2x1xi32>
    %217 = arith.cmpi eq, %37, %216 : vector<2x1xi32>
    %218 = vector.shape_cast %217 : vector<2x1xi1> to vector<2x1xi1>
    %219 = vector.broadcast %218 : vector<2x1xi1> to vector<2x16xi1>
    %220 = arith.select %219, %215, %170 : vector<2x16xi1>, vector<2x16xf32>
    %221 = vector.extract_strided_slice %45 {offsets = [0, 3], sizes = [2, 1], strides = [1, 1]} : vector<2x4xf32> to vector<2x1xf32>
    %cst_76 = arith.constant dense<0.000000e+00> : vector<2x64xf32>
    %222 = tpu.matmul %189, %28, %cst_76 {dimension_numbers = #tpu.dot_dimension_numbers<[1], [0], [0], [1], [0, 0, 1, 1], [], []>} : vector<2x16xf32>, vector<16x64xf32>, vector<2x64xf32> -> vector<2x64xf32>
    %223 = arith.addf %61, %222 : vector<2x64xf32>
    %224 = vector.extract_strided_slice %223 {offsets = [0, 0], sizes = [2, 48], strides = [1, 1]} : vector<2x64xf32> to vector<2x48xf32>
    %225 = arith.negf %224 : vector<2x48xf32>
    %226 = math.exp %225 : vector<2x48xf32>
    %cst_77 = arith.constant 1.000000e+00 : f32
    %227 = vector.broadcast %cst_77 : f32 to vector<2x48xf32>
    %228 = arith.addf %227, %226 : vector<2x48xf32>
    %229 = arith.divf %227, %228 : vector<2x48xf32>
    %230 = vector.extract_strided_slice %229 {offsets = [0, 0], sizes = [2, 16], strides = [1, 1]} : vector<2x48xf32> to vector<2x16xf32>
    %231 = vector.extract_strided_slice %229 {offsets = [0, 16], sizes = [2, 16], strides = [1, 1]} : vector<2x48xf32> to vector<2x16xf32>
    %232 = vector.extract_strided_slice %229 {offsets = [0, 32], sizes = [2, 16], strides = [1, 1]} : vector<2x48xf32> to vector<2x16xf32>
    %233 = vector.extract_strided_slice %223 {offsets = [0, 48], sizes = [2, 16], strides = [1, 1]} : vector<2x64xf32> to vector<2x16xf32>
    %234 = math.tanh %233 : vector<2x16xf32>
    %235 = arith.mulf %231, %187 : vector<2x16xf32>
    %236 = arith.mulf %230, %234 : vector<2x16xf32>
    %237 = arith.addf %235, %236 : vector<2x16xf32>
    %238 = math.tanh %237 : vector<2x16xf32>
    %239 = arith.mulf %232, %238 : vector<2x16xf32>
    %240 = tpu.concatenate %239, %208 in 1 : vector<2x16xf32>, vector<2x16xf32> -> vector<2x32xf32>
    %cst_78 = arith.constant dense<0.000000e+00> : vector<2x64xf32>
    %241 = tpu.matmul %240, %30, %cst_78 {dimension_numbers = #tpu.dot_dimension_numbers<[1], [0], [0], [1], [0, 0, 1, 1], [], []>} : vector<2x32xf32>, vector<32x64xf32>, vector<2x64xf32> -> vector<2x64xf32>
    %242 = arith.addf %241, %36 : vector<2x64xf32>
    %243 = vector.extract_strided_slice %242 {offsets = [0, 0], sizes = [2, 48], strides = [1, 1]} : vector<2x64xf32> to vector<2x48xf32>
    %244 = arith.negf %243 : vector<2x48xf32>
    %245 = math.exp %244 : vector<2x48xf32>
    %cst_79 = arith.constant 1.000000e+00 : f32
    %246 = vector.broadcast %cst_79 : f32 to vector<2x48xf32>
    %247 = arith.addf %246, %245 : vector<2x48xf32>
    %248 = arith.divf %246, %247 : vector<2x48xf32>
    %249 = vector.extract_strided_slice %248 {offsets = [0, 0], sizes = [2, 16], strides = [1, 1]} : vector<2x48xf32> to vector<2x16xf32>
    %250 = vector.extract_strided_slice %248 {offsets = [0, 16], sizes = [2, 16], strides = [1, 1]} : vector<2x48xf32> to vector<2x16xf32>
    %251 = vector.extract_strided_slice %248 {offsets = [0, 32], sizes = [2, 16], strides = [1, 1]} : vector<2x48xf32> to vector<2x16xf32>
    %252 = vector.extract_strided_slice %242 {offsets = [0, 48], sizes = [2, 16], strides = [1, 1]} : vector<2x64xf32> to vector<2x16xf32>
    %253 = math.tanh %252 : vector<2x16xf32>
    %254 = arith.mulf %250, %206 : vector<2x16xf32>
    %255 = arith.mulf %249, %253 : vector<2x16xf32>
    %256 = arith.addf %254, %255 : vector<2x16xf32>
    %257 = math.tanh %256 : vector<2x16xf32>
    %258 = arith.mulf %251, %257 : vector<2x16xf32>
    %cst_80 = arith.constant 1.000000e+00 : f32
    %259 = vector.broadcast %cst_80 : f32 to vector<2x1xf32>
    %260 = arith.subf %259, %221 : vector<2x1xf32>
    %261 = vector.broadcast %260 : vector<2x1xf32> to vector<2x16xf32>
    %262 = arith.mulf %261, %208 : vector<2x16xf32>
    %263 = vector.broadcast %221 : vector<2x1xf32> to vector<2x16xf32>
    %264 = arith.mulf %263, %258 : vector<2x16xf32>
    %265 = arith.addf %262, %264 : vector<2x16xf32>
    %c4_i32 = arith.constant 4 : i32
    %266 = vector.broadcast %c4_i32 : i32 to vector<2x1xi32>
    %267 = arith.cmpi eq, %37, %266 : vector<2x1xi32>
    %268 = vector.shape_cast %267 : vector<2x1xi1> to vector<2x1xi1>
    %269 = vector.broadcast %268 : vector<2x1xi1> to vector<2x16xi1>
    %270 = arith.select %269, %265, %220 : vector<2x16xi1>, vector<2x16xf32>
    %271 = vector.extract_strided_slice %47 {offsets = [0, 3], sizes = [2, 1], strides = [1, 1]} : vector<2x4xf32> to vector<2x1xf32>
    %cst_81 = arith.constant dense<0.000000e+00> : vector<2x64xf32>
    %272 = tpu.matmul %239, %28, %cst_81 {dimension_numbers = #tpu.dot_dimension_numbers<[1], [0], [0], [1], [0, 0, 1, 1], [], []>} : vector<2x16xf32>, vector<16x64xf32>, vector<2x64xf32> -> vector<2x64xf32>
    %273 = arith.addf %63, %272 : vector<2x64xf32>
    %274 = vector.extract_strided_slice %273 {offsets = [0, 0], sizes = [2, 48], strides = [1, 1]} : vector<2x64xf32> to vector<2x48xf32>
    %275 = arith.negf %274 : vector<2x48xf32>
    %276 = math.exp %275 : vector<2x48xf32>
    %cst_82 = arith.constant 1.000000e+00 : f32
    %277 = vector.broadcast %cst_82 : f32 to vector<2x48xf32>
    %278 = arith.addf %277, %276 : vector<2x48xf32>
    %279 = arith.divf %277, %278 : vector<2x48xf32>
    %280 = vector.extract_strided_slice %279 {offsets = [0, 0], sizes = [2, 16], strides = [1, 1]} : vector<2x48xf32> to vector<2x16xf32>
    %281 = vector.extract_strided_slice %279 {offsets = [0, 16], sizes = [2, 16], strides = [1, 1]} : vector<2x48xf32> to vector<2x16xf32>
    %282 = vector.extract_strided_slice %279 {offsets = [0, 32], sizes = [2, 16], strides = [1, 1]} : vector<2x48xf32> to vector<2x16xf32>
    %283 = vector.extract_strided_slice %273 {offsets = [0, 48], sizes = [2, 16], strides = [1, 1]} : vector<2x64xf32> to vector<2x16xf32>
    %284 = math.tanh %283 : vector<2x16xf32>
    %285 = arith.mulf %281, %237 : vector<2x16xf32>
    %286 = arith.mulf %280, %284 : vector<2x16xf32>
    %287 = arith.addf %285, %286 : vector<2x16xf32>
    %288 = math.tanh %287 : vector<2x16xf32>
    %289 = arith.mulf %282, %288 : vector<2x16xf32>
    %290 = tpu.concatenate %289, %258 in 1 : vector<2x16xf32>, vector<2x16xf32> -> vector<2x32xf32>
    %cst_83 = arith.constant dense<0.000000e+00> : vector<2x64xf32>
    %291 = tpu.matmul %290, %30, %cst_83 {dimension_numbers = #tpu.dot_dimension_numbers<[1], [0], [0], [1], [0, 0, 1, 1], [], []>} : vector<2x32xf32>, vector<32x64xf32>, vector<2x64xf32> -> vector<2x64xf32>
    %292 = arith.addf %291, %36 : vector<2x64xf32>
    %293 = vector.extract_strided_slice %292 {offsets = [0, 0], sizes = [2, 48], strides = [1, 1]} : vector<2x64xf32> to vector<2x48xf32>
    %294 = arith.negf %293 : vector<2x48xf32>
    %295 = math.exp %294 : vector<2x48xf32>
    %cst_84 = arith.constant 1.000000e+00 : f32
    %296 = vector.broadcast %cst_84 : f32 to vector<2x48xf32>
    %297 = arith.addf %296, %295 : vector<2x48xf32>
    %298 = arith.divf %296, %297 : vector<2x48xf32>
    %299 = vector.extract_strided_slice %298 {offsets = [0, 0], sizes = [2, 16], strides = [1, 1]} : vector<2x48xf32> to vector<2x16xf32>
    %300 = vector.extract_strided_slice %298 {offsets = [0, 16], sizes = [2, 16], strides = [1, 1]} : vector<2x48xf32> to vector<2x16xf32>
    %301 = vector.extract_strided_slice %298 {offsets = [0, 32], sizes = [2, 16], strides = [1, 1]} : vector<2x48xf32> to vector<2x16xf32>
    %302 = vector.extract_strided_slice %292 {offsets = [0, 48], sizes = [2, 16], strides = [1, 1]} : vector<2x64xf32> to vector<2x16xf32>
    %303 = math.tanh %302 : vector<2x16xf32>
    %304 = arith.mulf %300, %256 : vector<2x16xf32>
    %305 = arith.mulf %299, %303 : vector<2x16xf32>
    %306 = arith.addf %304, %305 : vector<2x16xf32>
    %307 = math.tanh %306 : vector<2x16xf32>
    %308 = arith.mulf %301, %307 : vector<2x16xf32>
    %cst_85 = arith.constant 1.000000e+00 : f32
    %309 = vector.broadcast %cst_85 : f32 to vector<2x1xf32>
    %310 = arith.subf %309, %271 : vector<2x1xf32>
    %311 = vector.broadcast %310 : vector<2x1xf32> to vector<2x16xf32>
    %312 = arith.mulf %311, %258 : vector<2x16xf32>
    %313 = vector.broadcast %271 : vector<2x1xf32> to vector<2x16xf32>
    %314 = arith.mulf %313, %308 : vector<2x16xf32>
    %315 = arith.addf %312, %314 : vector<2x16xf32>
    %c5_i32 = arith.constant 5 : i32
    %316 = vector.broadcast %c5_i32 : i32 to vector<2x1xi32>
    %317 = arith.cmpi eq, %37, %316 : vector<2x1xi32>
    %318 = vector.shape_cast %317 : vector<2x1xi1> to vector<2x1xi1>
    %319 = vector.broadcast %318 : vector<2x1xi1> to vector<2x16xi1>
    %320 = arith.select %319, %315, %270 : vector<2x16xi1>, vector<2x16xf32>
    %321 = vector.extract_strided_slice %49 {offsets = [0, 3], sizes = [2, 1], strides = [1, 1]} : vector<2x4xf32> to vector<2x1xf32>
    %cst_86 = arith.constant dense<0.000000e+00> : vector<2x64xf32>
    %322 = tpu.matmul %289, %28, %cst_86 {dimension_numbers = #tpu.dot_dimension_numbers<[1], [0], [0], [1], [0, 0, 1, 1], [], []>} : vector<2x16xf32>, vector<16x64xf32>, vector<2x64xf32> -> vector<2x64xf32>
    %323 = arith.addf %65, %322 : vector<2x64xf32>
    %324 = vector.extract_strided_slice %323 {offsets = [0, 0], sizes = [2, 48], strides = [1, 1]} : vector<2x64xf32> to vector<2x48xf32>
    %325 = arith.negf %324 : vector<2x48xf32>
    %326 = math.exp %325 : vector<2x48xf32>
    %cst_87 = arith.constant 1.000000e+00 : f32
    %327 = vector.broadcast %cst_87 : f32 to vector<2x48xf32>
    %328 = arith.addf %327, %326 : vector<2x48xf32>
    %329 = arith.divf %327, %328 : vector<2x48xf32>
    %330 = vector.extract_strided_slice %329 {offsets = [0, 0], sizes = [2, 16], strides = [1, 1]} : vector<2x48xf32> to vector<2x16xf32>
    %331 = vector.extract_strided_slice %329 {offsets = [0, 16], sizes = [2, 16], strides = [1, 1]} : vector<2x48xf32> to vector<2x16xf32>
    %332 = vector.extract_strided_slice %329 {offsets = [0, 32], sizes = [2, 16], strides = [1, 1]} : vector<2x48xf32> to vector<2x16xf32>
    %333 = vector.extract_strided_slice %323 {offsets = [0, 48], sizes = [2, 16], strides = [1, 1]} : vector<2x64xf32> to vector<2x16xf32>
    %334 = math.tanh %333 : vector<2x16xf32>
    %335 = arith.mulf %331, %287 : vector<2x16xf32>
    %336 = arith.mulf %330, %334 : vector<2x16xf32>
    %337 = arith.addf %335, %336 : vector<2x16xf32>
    %338 = math.tanh %337 : vector<2x16xf32>
    %339 = arith.mulf %332, %338 : vector<2x16xf32>
    %340 = tpu.concatenate %339, %308 in 1 : vector<2x16xf32>, vector<2x16xf32> -> vector<2x32xf32>
    %cst_88 = arith.constant dense<0.000000e+00> : vector<2x64xf32>
    %341 = tpu.matmul %340, %30, %cst_88 {dimension_numbers = #tpu.dot_dimension_numbers<[1], [0], [0], [1], [0, 0, 1, 1], [], []>} : vector<2x32xf32>, vector<32x64xf32>, vector<2x64xf32> -> vector<2x64xf32>
    %342 = arith.addf %341, %36 : vector<2x64xf32>
    %343 = vector.extract_strided_slice %342 {offsets = [0, 0], sizes = [2, 48], strides = [1, 1]} : vector<2x64xf32> to vector<2x48xf32>
    %344 = arith.negf %343 : vector<2x48xf32>
    %345 = math.exp %344 : vector<2x48xf32>
    %cst_89 = arith.constant 1.000000e+00 : f32
    %346 = vector.broadcast %cst_89 : f32 to vector<2x48xf32>
    %347 = arith.addf %346, %345 : vector<2x48xf32>
    %348 = arith.divf %346, %347 : vector<2x48xf32>
    %349 = vector.extract_strided_slice %348 {offsets = [0, 0], sizes = [2, 16], strides = [1, 1]} : vector<2x48xf32> to vector<2x16xf32>
    %350 = vector.extract_strided_slice %348 {offsets = [0, 16], sizes = [2, 16], strides = [1, 1]} : vector<2x48xf32> to vector<2x16xf32>
    %351 = vector.extract_strided_slice %348 {offsets = [0, 32], sizes = [2, 16], strides = [1, 1]} : vector<2x48xf32> to vector<2x16xf32>
    %352 = vector.extract_strided_slice %342 {offsets = [0, 48], sizes = [2, 16], strides = [1, 1]} : vector<2x64xf32> to vector<2x16xf32>
    %353 = math.tanh %352 : vector<2x16xf32>
    %354 = arith.mulf %350, %306 : vector<2x16xf32>
    %355 = arith.mulf %349, %353 : vector<2x16xf32>
    %356 = arith.addf %354, %355 : vector<2x16xf32>
    %357 = math.tanh %356 : vector<2x16xf32>
    %358 = arith.mulf %351, %357 : vector<2x16xf32>
    %cst_90 = arith.constant 1.000000e+00 : f32
    %359 = vector.broadcast %cst_90 : f32 to vector<2x1xf32>
    %360 = arith.subf %359, %321 : vector<2x1xf32>
    %361 = vector.broadcast %360 : vector<2x1xf32> to vector<2x16xf32>
    %362 = arith.mulf %361, %308 : vector<2x16xf32>
    %363 = vector.broadcast %321 : vector<2x1xf32> to vector<2x16xf32>
    %364 = arith.mulf %363, %358 : vector<2x16xf32>
    %365 = arith.addf %362, %364 : vector<2x16xf32>
    %c6_i32 = arith.constant 6 : i32
    %366 = vector.broadcast %c6_i32 : i32 to vector<2x1xi32>
    %367 = arith.cmpi eq, %37, %366 : vector<2x1xi32>
    %368 = vector.shape_cast %367 : vector<2x1xi1> to vector<2x1xi1>
    %369 = vector.broadcast %368 : vector<2x1xi1> to vector<2x16xi1>
    %370 = arith.select %369, %365, %320 : vector<2x16xi1>, vector<2x16xf32>
    %371 = vector.extract_strided_slice %51 {offsets = [0, 3], sizes = [2, 1], strides = [1, 1]} : vector<2x4xf32> to vector<2x1xf32>
    %cst_91 = arith.constant dense<0.000000e+00> : vector<2x64xf32>
    %372 = tpu.matmul %339, %28, %cst_91 {dimension_numbers = #tpu.dot_dimension_numbers<[1], [0], [0], [1], [0, 0, 1, 1], [], []>} : vector<2x16xf32>, vector<16x64xf32>, vector<2x64xf32> -> vector<2x64xf32>
    %373 = arith.addf %67, %372 : vector<2x64xf32>
    %374 = vector.extract_strided_slice %373 {offsets = [0, 0], sizes = [2, 48], strides = [1, 1]} : vector<2x64xf32> to vector<2x48xf32>
    %375 = arith.negf %374 : vector<2x48xf32>
    %376 = math.exp %375 : vector<2x48xf32>
    %cst_92 = arith.constant 1.000000e+00 : f32
    %377 = vector.broadcast %cst_92 : f32 to vector<2x48xf32>
    %378 = arith.addf %377, %376 : vector<2x48xf32>
    %379 = arith.divf %377, %378 : vector<2x48xf32>
    %380 = vector.extract_strided_slice %379 {offsets = [0, 0], sizes = [2, 16], strides = [1, 1]} : vector<2x48xf32> to vector<2x16xf32>
    %381 = vector.extract_strided_slice %379 {offsets = [0, 16], sizes = [2, 16], strides = [1, 1]} : vector<2x48xf32> to vector<2x16xf32>
    %382 = vector.extract_strided_slice %379 {offsets = [0, 32], sizes = [2, 16], strides = [1, 1]} : vector<2x48xf32> to vector<2x16xf32>
    %383 = vector.extract_strided_slice %373 {offsets = [0, 48], sizes = [2, 16], strides = [1, 1]} : vector<2x64xf32> to vector<2x16xf32>
    %384 = math.tanh %383 : vector<2x16xf32>
    %385 = arith.mulf %381, %337 : vector<2x16xf32>
    %386 = arith.mulf %380, %384 : vector<2x16xf32>
    %387 = arith.addf %385, %386 : vector<2x16xf32>
    %388 = math.tanh %387 : vector<2x16xf32>
    %389 = arith.mulf %382, %388 : vector<2x16xf32>
    %390 = tpu.concatenate %389, %358 in 1 : vector<2x16xf32>, vector<2x16xf32> -> vector<2x32xf32>
    %cst_93 = arith.constant dense<0.000000e+00> : vector<2x64xf32>
    %391 = tpu.matmul %390, %30, %cst_93 {dimension_numbers = #tpu.dot_dimension_numbers<[1], [0], [0], [1], [0, 0, 1, 1], [], []>} : vector<2x32xf32>, vector<32x64xf32>, vector<2x64xf32> -> vector<2x64xf32>
    %392 = arith.addf %391, %36 : vector<2x64xf32>
    %393 = vector.extract_strided_slice %392 {offsets = [0, 0], sizes = [2, 48], strides = [1, 1]} : vector<2x64xf32> to vector<2x48xf32>
    %394 = arith.negf %393 : vector<2x48xf32>
    %395 = math.exp %394 : vector<2x48xf32>
    %cst_94 = arith.constant 1.000000e+00 : f32
    %396 = vector.broadcast %cst_94 : f32 to vector<2x48xf32>
    %397 = arith.addf %396, %395 : vector<2x48xf32>
    %398 = arith.divf %396, %397 : vector<2x48xf32>
    %399 = vector.extract_strided_slice %398 {offsets = [0, 0], sizes = [2, 16], strides = [1, 1]} : vector<2x48xf32> to vector<2x16xf32>
    %400 = vector.extract_strided_slice %398 {offsets = [0, 16], sizes = [2, 16], strides = [1, 1]} : vector<2x48xf32> to vector<2x16xf32>
    %401 = vector.extract_strided_slice %398 {offsets = [0, 32], sizes = [2, 16], strides = [1, 1]} : vector<2x48xf32> to vector<2x16xf32>
    %402 = vector.extract_strided_slice %392 {offsets = [0, 48], sizes = [2, 16], strides = [1, 1]} : vector<2x64xf32> to vector<2x16xf32>
    %403 = math.tanh %402 : vector<2x16xf32>
    %404 = arith.mulf %400, %356 : vector<2x16xf32>
    %405 = arith.mulf %399, %403 : vector<2x16xf32>
    %406 = arith.addf %404, %405 : vector<2x16xf32>
    %407 = math.tanh %406 : vector<2x16xf32>
    %408 = arith.mulf %401, %407 : vector<2x16xf32>
    %cst_95 = arith.constant 1.000000e+00 : f32
    %409 = vector.broadcast %cst_95 : f32 to vector<2x1xf32>
    %410 = arith.subf %409, %371 : vector<2x1xf32>
    %411 = vector.broadcast %410 : vector<2x1xf32> to vector<2x16xf32>
    %412 = arith.mulf %411, %358 : vector<2x16xf32>
    %413 = vector.broadcast %371 : vector<2x1xf32> to vector<2x16xf32>
    %414 = arith.mulf %413, %408 : vector<2x16xf32>
    %415 = arith.addf %412, %414 : vector<2x16xf32>
    %c7_i32 = arith.constant 7 : i32
    %416 = vector.broadcast %c7_i32 : i32 to vector<2x1xi32>
    %417 = arith.cmpi eq, %37, %416 : vector<2x1xi32>
    %418 = vector.shape_cast %417 : vector<2x1xi1> to vector<2x1xi1>
    %419 = vector.broadcast %418 : vector<2x1xi1> to vector<2x16xi1>
    %420 = arith.select %419, %415, %370 : vector<2x16xi1>, vector<2x16xf32>
    %421 = vector.extract_strided_slice %53 {offsets = [0, 3], sizes = [2, 1], strides = [1, 1]} : vector<2x4xf32> to vector<2x1xf32>
    %cst_96 = arith.constant dense<0.000000e+00> : vector<2x64xf32>
    %422 = tpu.matmul %389, %28, %cst_96 {dimension_numbers = #tpu.dot_dimension_numbers<[1], [0], [0], [1], [0, 0, 1, 1], [], []>} : vector<2x16xf32>, vector<16x64xf32>, vector<2x64xf32> -> vector<2x64xf32>
    %423 = arith.addf %69, %422 : vector<2x64xf32>
    %424 = vector.extract_strided_slice %423 {offsets = [0, 0], sizes = [2, 48], strides = [1, 1]} : vector<2x64xf32> to vector<2x48xf32>
    %425 = arith.negf %424 : vector<2x48xf32>
    %426 = math.exp %425 : vector<2x48xf32>
    %cst_97 = arith.constant 1.000000e+00 : f32
    %427 = vector.broadcast %cst_97 : f32 to vector<2x48xf32>
    %428 = arith.addf %427, %426 : vector<2x48xf32>
    %429 = arith.divf %427, %428 : vector<2x48xf32>
    %430 = vector.extract_strided_slice %429 {offsets = [0, 0], sizes = [2, 16], strides = [1, 1]} : vector<2x48xf32> to vector<2x16xf32>
    %431 = vector.extract_strided_slice %429 {offsets = [0, 16], sizes = [2, 16], strides = [1, 1]} : vector<2x48xf32> to vector<2x16xf32>
    %432 = vector.extract_strided_slice %429 {offsets = [0, 32], sizes = [2, 16], strides = [1, 1]} : vector<2x48xf32> to vector<2x16xf32>
    %433 = vector.extract_strided_slice %423 {offsets = [0, 48], sizes = [2, 16], strides = [1, 1]} : vector<2x64xf32> to vector<2x16xf32>
    %434 = math.tanh %433 : vector<2x16xf32>
    %435 = arith.mulf %431, %387 : vector<2x16xf32>
    %436 = arith.mulf %430, %434 : vector<2x16xf32>
    %437 = arith.addf %435, %436 : vector<2x16xf32>
    %438 = math.tanh %437 : vector<2x16xf32>
    %439 = arith.mulf %432, %438 : vector<2x16xf32>
    %440 = tpu.concatenate %439, %408 in 1 : vector<2x16xf32>, vector<2x16xf32> -> vector<2x32xf32>
    %cst_98 = arith.constant dense<0.000000e+00> : vector<2x64xf32>
    %441 = tpu.matmul %440, %30, %cst_98 {dimension_numbers = #tpu.dot_dimension_numbers<[1], [0], [0], [1], [0, 0, 1, 1], [], []>} : vector<2x32xf32>, vector<32x64xf32>, vector<2x64xf32> -> vector<2x64xf32>
    %442 = arith.addf %441, %36 : vector<2x64xf32>
    %443 = vector.extract_strided_slice %442 {offsets = [0, 0], sizes = [2, 48], strides = [1, 1]} : vector<2x64xf32> to vector<2x48xf32>
    %444 = arith.negf %443 : vector<2x48xf32>
    %445 = math.exp %444 : vector<2x48xf32>
    %cst_99 = arith.constant 1.000000e+00 : f32
    %446 = vector.broadcast %cst_99 : f32 to vector<2x48xf32>
    %447 = arith.addf %446, %445 : vector<2x48xf32>
    %448 = arith.divf %446, %447 : vector<2x48xf32>
    %449 = vector.extract_strided_slice %448 {offsets = [0, 0], sizes = [2, 16], strides = [1, 1]} : vector<2x48xf32> to vector<2x16xf32>
    %450 = vector.extract_strided_slice %448 {offsets = [0, 16], sizes = [2, 16], strides = [1, 1]} : vector<2x48xf32> to vector<2x16xf32>
    %451 = vector.extract_strided_slice %448 {offsets = [0, 32], sizes = [2, 16], strides = [1, 1]} : vector<2x48xf32> to vector<2x16xf32>
    %452 = vector.extract_strided_slice %442 {offsets = [0, 48], sizes = [2, 16], strides = [1, 1]} : vector<2x64xf32> to vector<2x16xf32>
    %453 = math.tanh %452 : vector<2x16xf32>
    %454 = arith.mulf %450, %406 : vector<2x16xf32>
    %455 = arith.mulf %449, %453 : vector<2x16xf32>
    %456 = arith.addf %454, %455 : vector<2x16xf32>
    %457 = math.tanh %456 : vector<2x16xf32>
    %458 = arith.mulf %451, %457 : vector<2x16xf32>
    %cst_100 = arith.constant 1.000000e+00 : f32
    %459 = vector.broadcast %cst_100 : f32 to vector<2x1xf32>
    %460 = arith.subf %459, %421 : vector<2x1xf32>
    %461 = vector.broadcast %460 : vector<2x1xf32> to vector<2x16xf32>
    %462 = arith.mulf %461, %408 : vector<2x16xf32>
    %463 = vector.broadcast %421 : vector<2x1xf32> to vector<2x16xf32>
    %464 = arith.mulf %463, %458 : vector<2x16xf32>
    %465 = arith.addf %462, %464 : vector<2x16xf32>
    %c8_i32 = arith.constant 8 : i32
    %466 = vector.broadcast %c8_i32 : i32 to vector<2x1xi32>
    %467 = arith.cmpi eq, %37, %466 : vector<2x1xi32>
    %468 = vector.shape_cast %467 : vector<2x1xi1> to vector<2x1xi1>
    %469 = vector.broadcast %468 : vector<2x1xi1> to vector<2x16xi1>
    %470 = arith.select %469, %465, %420 : vector<2x16xi1>, vector<2x16xf32>
    %c6_101 = arith.constant 6 : index
    %c0_102 = arith.constant 0 : index
    %c0_103 = arith.constant 0 : index
    %471 = vector.load %arg3[%c6_101, %c0_102, %c0_103] : memref<9x64x64xf32, #tpu.memory_space<vmem>>, vector<1x16x32xf32>
    %472 = vector.shape_cast %471 : vector<1x16x32xf32> to vector<16x32xf32>
    %c5_104 = arith.constant 5 : index
    %c0_105 = arith.constant 0 : index
    %473 = vector.load %arg4[%c5_104, %c0_105] : memref<8x64xf32, #tpu.memory_space<vmem>>, vector<1x32xf32>
    %cst_106 = arith.constant dense<0.000000e+00> : vector<2x32xf32>
    %474 = tpu.matmul %470, %472, %cst_106 {dimension_numbers = #tpu.dot_dimension_numbers<[1], [0], [0], [1], [0, 0, 1, 1], [], []>} : vector<2x16xf32>, vector<16x32xf32>, vector<2x32xf32> -> vector<2x32xf32>
    %475 = vector.broadcast %473 : vector<1x32xf32> to vector<2x32xf32>
    %476 = arith.addf %474, %475 : vector<2x32xf32>
    %477 = math.tanh %476 : vector<2x32xf32>
    %c7_107 = arith.constant 7 : index
    %c0_108 = arith.constant 0 : index
    %c0_109 = arith.constant 0 : index
    %478 = vector.load %arg3[%c7_107, %c0_108, %c0_109] : memref<9x64x64xf32, #tpu.memory_space<vmem>>, vector<1x32x32xf32>
    %479 = vector.shape_cast %478 : vector<1x32x32xf32> to vector<32x32xf32>
    %c6_110 = arith.constant 6 : index
    %c0_111 = arith.constant 0 : index
    %480 = vector.load %arg4[%c6_110, %c0_111] : memref<8x64xf32, #tpu.memory_space<vmem>>, vector<1x32xf32>
    %cst_112 = arith.constant dense<0.000000e+00> : vector<2x32xf32>
    %481 = tpu.matmul %477, %479, %cst_112 {dimension_numbers = #tpu.dot_dimension_numbers<[1], [0], [0], [1], [0, 0, 1, 1], [], []>} : vector<2x32xf32>, vector<32x32xf32>, vector<2x32xf32> -> vector<2x32xf32>
    %482 = vector.broadcast %480 : vector<1x32xf32> to vector<2x32xf32>
    %483 = arith.addf %481, %482 : vector<2x32xf32>
    %484 = math.tanh %483 : vector<2x32xf32>
    %c8 = arith.constant 8 : index
    %c0_113 = arith.constant 0 : index
    %c0_114 = arith.constant 0 : index
    %485 = vector.load %arg3[%c8, %c0_113, %c0_114] : memref<9x64x64xf32, #tpu.memory_space<vmem>>, vector<1x32x6xf32>
    %486 = vector.shape_cast %485 : vector<1x32x6xf32> to vector<32x6xf32>
    %c7_115 = arith.constant 7 : index
    %c0_116 = arith.constant 0 : index
    %487 = vector.load %arg4[%c7_115, %c0_116] : memref<8x64xf32, #tpu.memory_space<vmem>>, vector<1x6xf32>
    %cst_117 = arith.constant dense<0.000000e+00> : vector<2x6xf32>
    %488 = tpu.matmul %484, %486, %cst_117 {dimension_numbers = #tpu.dot_dimension_numbers<[1], [0], [0], [1], [0, 0, 1, 1], [], []>} : vector<2x32xf32>, vector<32x6xf32>, vector<2x6xf32> -> vector<2x6xf32>
    %489 = vector.broadcast %487 : vector<1x6xf32> to vector<2x6xf32>
    %490 = arith.addf %488, %489 : vector<2x6xf32>
    %c0_118 = arith.constant 0 : index
    %c0_119 = arith.constant 0 : index
    %491 = vector.load %arg5[%c0_118, %c0_119] : memref<2x6xf32, #tpu.memory_space<vmem>>, vector<2x6xf32>
    tpu.vector_store %arg5[%c0_118, %c0_119], %490 {strides = array<i32>} : memref<2x6xf32, #tpu.memory_space<vmem>>, vector<2x6xf32>,
    return
  }
}

</mosaic_0001>

<bundles_post_ra>
// kernel: causal_flow_forward.1
= control target key start
LH: loop header
LB: loop body
LE: loop exit
PB: predicated region body
PF: predicated region fallthrough
CT: control target
= control target key end

     0   :  { %10 = vsyncpa [#allocation3], 0  ;;  %s2439_s0 = inlined_call_operand.vmem [shape: f32[8,2,4], index: 0, kind: input, shape index: {}]   ;;  %s2440_s1 = inlined_call_operand.vmem [shape: f32[2,6], index: 1, kind: input, shape index: {}]   ;;  %s2441_s2 = inlined_call_operand.vmem [shape: s32[2,1], index: 2, kind: input, shape index: {}]   ;;  %s2442_s3 = inlined_call_operand.hbm [shape: f32[9,64,64], index: 3, kind: input, shape index: {}]   ;;  %s2443_s4 = inlined_call_operand.vmem [shape: f32[8,64], index: 4, kind: input, shape index: {}]   ;;  %s2444_s5 = inlined_call_operand.hbm [shape: f32[2,6], index: 5, kind: output, shape index: {}]  }
   0x1   :  { %11 = vsyncpa [#allocation4], 0  ;;  %s22_s20 = sshll.u32 %s2442_s3, 4  ;;  %s1960_s21 = smov [#allocation2]   ;;  %s23_s20 = int_to_ptr.hbm [resolvable:$true] %s22_s20 }
   0x2   :  { %s24_s22 = sshll.u32 %s1960_s21, 4  ;;  %s1961_s23 = smov 128   ;;  %s25_s22 = int_to_ptr.vmem [resolvable:$true] %s24_s22 }
   0x3   :  { %s1962_s24 = smov 8  }
   0x4   :  { %30 = dma.hbm_to_vmem [thread:$0]  %s23_s20, 9216, %s25_s22, [#allocation3], %s1961_s23, %s1961_s23, %s1962_s24  }
   0x5   :  { %1956 = dma.done.wait [#allocation3], 9216  }
   0x6   :  { %1957 = vsyncadd [#allocation3], 4294958080  ;;  %vm45_vm0 = vcmask 1045504   ;;  %vm41_vm1 = vcmask 48128   ;;  %v38_v0 = vld [vmem:[#allocation2] sm:$0x3f] }
   0x7   :  { %v37_v1 = vld [vmem:[%s2440_s1] sm:$0x3]  ;;  %v78_v2 = vld [vmem:[#allocation2 + $0x78] sm:$0xff]  ;;  %1669 = vmatpush.msk.msra.mxu0 %vm45_vm0, %v38_v0  ;;  %v77_v3 = vld [vmem:[#allocation2 + $0x70] sm:$0xff]  ;;  %vm81_vm2 = vcmask 523264   ;;  %vm174_vm3 = vcmask 1043456  }
   0x8   :  { %93 = vmatpush.msra.mxu1 %v78_v2  ;;  %1670 = vmatmul.msk.f32.vlgmr.msra.gmra.mxu0 %vm41_vm1, %v37_v1  ;;  %v76_v4 = vld [vmem:[#allocation2 + $0x68] sm:$0xff]  ;;  %v75_v5 = vld [vmem:[#allocation2 + $0x60] sm:$0xff]  ;;  %v74_v6 = vld [vmem:[#allocation2 + $0x58] sm:$0xff]  ;;  %vm170_vm4 = vcmask 31744   ;;  %vm359_vm5 = vcmask 130048   ;;  %s1963_s14 = smov 80  }
   0x9   :  { %v73_v7 = vld [vmem:[#allocation2 + $0x50] sm:$0xff]  ;;  %v72_v8 = vld [vmem:[#allocation2 + $0x48] sm:$0xff]  ;;  %v71_v9 = vld [vmem:[#allocation2 + $0x40] sm:$0xff]  ;;  %s1964_s15 = smov 16   ;;  %s1965_s20 = smov 96   ;;  %vm426_vm10 = vcmask 261120  }
   0xa   :  { %94 = vmatpush.msra.mxu1 %v77_v3  ;;  %v114_v10 = vld [vmem:[#allocation2 + $0xb8] sm:$0xff]  ;;  %v113_v11 = vld [vmem:[#allocation2 + $0xb0] sm:$0xff]  ;;  %v112_v12 = vld [vmem:[#allocation2 + $0xa8] sm:$0xff]  ;;  %s1966_s1 = smov 112   ;;  %s1969_s27 = smov [#allocation5]  }
   0xb   :  { %128 = vmatpush.msra.mxu2 %v114_v10  ;;  %v1754_v13 = vld [vmem:[%s2443_s4] ss:$0 sm:$0xff]  ;;  %v110_v18 = vld [vmem:[#allocation2 + $0x98] sm:$0xff]  ;;  %v109_v19 = vld [vmem:[#allocation2 + $0x90] sm:$0xff]  ;;  %s1657_s28 = sshll.u32 %s1969_s27, 4  ;;  %s1659_s6 = sshll.u32 %s2444_s5, 4  ;;  %s1658_s28 = int_to_ptr.vmem [resolvable:$true] %s1657_s28  ;;  %s1660_s6 = int_to_ptr.hbm [resolvable:$true] %s1659_s6 }
   0xc   :  { %95 = vmatpush.msra.mxu1 %v76_v4  ;;  %v111_v17 = vld [vmem:[#allocation2 + $0xa0] sm:$0xff]  ;;  %v108_v20 = vld [vmem:[#allocation2 + $0x88] sm:$0xff]  ;;  %v2083_v0 = vld [vmem:[#allocation2 + $0x158] sm:$0xff] }
   0xd   :  { %129 = vmatpush.msra.mxu2 %v113_v11  ;;  %v107_v21 = vld [vmem:[#allocation2 + $0x80] sm:$0xff]  ;;  %v2033_v25 = vld [vmem:[#allocation2 + $0x108] sm:$0xff]  ;;  %v2087_v1 = vld [vmem:[#allocation2 + $0x150] sm:$0xff] }
   0xe   :  { %96 = vmatpush.msra.mxu1 %v75_v5  ;;  %v2010_v22 = vld [vmem:[#allocation2 + $0xc0] sm:$0xf]  ;;  %v1674_v24 = vld [vmem:[%s2439_s0 + $0x4] sm:$0x3]  ;;  %v1676_v27 = vld [vmem:[%s2439_s0 + $0x8] sm:$0x3] }
   0xf   :  { %130 = vmatpush.msra.mxu2 %v112_v12  ;;  %v155_v23 = vld [vmem:[%s2439_s0] sm:$0x3]  ;;  %1680 = vmatpush.msk.msra.mxu3 %vm174_vm3, %v2010_v22  ;;  %v1756_v32 = vld [vmem:[%s2443_s4 + $0x2] ss:$0 sm:$0xff]  ;;  %v2068_v38 = vld [vmem:[%s2443_s4 + $0x3] ss:$0 sm:$0xff] }
  0x10   :  { %97 = vmatpush.msra.mxu1 %v74_v6  ;;  %1681 = vmatmul.msk.f32.vlgmr.msra.gmra.mxu3 %vm170_vm4, %v155_v23  ;;  %v2036_v26 = vld [vmem:[#allocation2 + $0x100] sm:$0xff]  ;;  %v1678_v62 = vld [vmem:[%s2439_s0 + $0xc] sm:$0x3]  ;;  %v1677_v63 = vld [vmem:[%s2439_s0 + $0xa] sm:$0x3] }
  0x11   :  { %131 = vmatpush.msra.mxu2 %v111_v17  ;;  %1684 = vmatpush.msk.msrb.mxu3 %vm174_vm3, %v2010_v22  ;;  %v1755_v28 = vld [vmem:[%s2443_s4 + $0x1] ss:$0 sm:$0xff]  ;;  %v2091_v2 = vld [vmem:[#allocation2 + $0x148] sm:$0xff]  ;;  %v1673_v6 = vld [vmem:[%s2439_s0 + $0x2] sm:$0x3] }
  0x12   :  { %98 = vmatpush.msra.mxu1 %v73_v7  ;;  %1682 = vmatpush.msk.msrb.mxu0 %vm174_vm3, %v2010_v22  ;;  %v2097_v5 = vld [vmem:[#allocation2 + $0x140] sm:$0xff] }
  0x13   :  { %132 = vmatpush.msra.mxu2 %v110_v18  ;;  %1688 = vmatpush.msk.msra.mxu3 %vm174_vm3, %v2010_v22 }
  0x14   :  { %99 = vmatpush.msra.mxu1 %v72_v8  ;;  %1686 = vmatpush.msk.msra.mxu0 %vm174_vm3, %v2010_v22 }
  0x15   :  { %133 = vmatpush.msra.mxu2 %v109_v19  ;;  %1683 = vmatmul.msk.f32.vlgmr.msrb.gmra.mxu0 %vm170_vm4, %v1673_v6 }
  0x16   :  { %100 = vmatpush.msra.mxu1 %v71_v9  ;;  %1694 = vmatpush.msk.msrb.mxu0 %vm174_vm3, %v2010_v22 }
  0x17   :  { %134 = vmatpush.msra.mxu2 %v108_v20 }
  0x18   :  { %1690 = vmatpush.msk.msrb.mxu1 %vm174_vm3, %v2010_v22  ;;  %1685 = vmatmul.msk.f32.vlgmr.msrb.gmra.mxu3 %vm170_vm4, %v1674_v24 }
  0x19   :  { %135 = vmatpush.msra.mxu2 %v107_v21  ;;  %377 = vmatpush.msrb.mxu3 %v2033_v25 }
  0x1b   :  { %1692 = vmatpush.msk.msrb.mxu2 %vm174_vm3, %v2010_v22  ;;  %378 = vmatpush.msrb.mxu3 %v2036_v26 }
  0x20   :  { %1689 = vmatmul.msk.f32.vlgmr.msra.gmra.mxu3 %vm170_vm4, %v1676_v27 }
  0x21   :  { %680 = vmatpush.msra.mxu3 %v2033_v25 }
  0x23   :  { %681 = vmatpush.msra.mxu3 %v2036_v26 }
  0x85   :  { %v66_v14 = vpop.f32.mrf.mxu0 }
  0x86   :  { %v67_v15 = vadd.f32 %v1754_v13, %v66_v14 }
  0x88   :  { %1762 = vtanh.f32 %v67_v15  ;;  %v2128_v15 = vld [vmem:[%s2443_s4 + $0x4] ss:$0 sm:$0xff] }
  0x8e   :  { %v1763_v16 = vpop.eup %1762 }
  0x8f   :  { %1671 = vmatmul.msk.f32.vlgmr.msra.gmra.mxu1 %vm81_vm2, %v1763_v16 }
  0x90   :  { %442 = vmatpush.msra.mxu1 %v2083_v0 }
  0x92   :  { %443 = vmatpush.msra.mxu1 %v2087_v1  ;;  %v218_v11 = vpop.f32.mrf.mxu0 }
  0x93   :  { %v195_v35 = vpop.f32.mrf.mxu3  ;;  %v219_v12 = vadd.f32 %v2068_v38, %v218_v11  ;;  %v1679_v11 = vld [vmem:[%s2439_s0 + $0xe] sm:$0x3] }
  0x94   :  { %v196_v39 = vadd.f32 %v2068_v38, %v195_v35  ;;  %444 = vmatpush.msra.mxu1 %v2091_v2 }
  0x96   :  { %445 = vmatpush.msra.mxu1 %v2097_v5 }
  0x97   :  { %1691 = vmatmul.msk.f32.vlgmr.msrb.gmra.mxu1 %vm170_vm4, %v1677_v63 }
  0x98   :  { %748 = vmatpush.msrb.mxu1 %v2083_v0 }
  0x9a   :  { %749 = vmatpush.msrb.mxu1 %v2087_v1 }
  0x9b   :  { %v2061_v36 = vpop.f32.mrf.mxu3 }
  0x9c   :  { %750 = vmatpush.msrb.mxu1 %v2091_v2 }
  0x9e   :  { %751 = vmatpush.msrb.mxu1 %v2097_v5 }
  0xa3   :  { %v2063_v37 = vpop.f32.mrf.mxu3 }
 0x10c   :  { %v102_v29 = vpop.f32.mrf.mxu1 }
 0x10d   :  { %v103_v30 = vadd.f32 %v1755_v28, %v102_v29 }
 0x10f   :  { %1764 = vtanh.f32 %v103_v30 }
 0x114   :  { %v2122_v10 = vpop.f32.mrf.mxu1 }
 0x115   :  { %v1765_v31 = vpop.eup %1764 }
 0x116   :  { %1672 = vmatmul.msk.f32.vlgmr.msra.gmra.mxu2 %vm81_vm2, %v1765_v31 }
 0x117   :  { %527 = vmatpush.msra.mxu2 %v2033_v25 }
 0x119   :  { %528 = vmatpush.msra.mxu2 %v2036_v26 }
 0x11e   :  { %1693 = vmatmul.msk.f32.vlgmr.msrb.gmra.mxu2 %vm170_vm4, %v1678_v62 }
 0x11f   :  { %829 = vmatpush.msrb.mxu2 %v2033_v25 }
 0x121   :  { %830 = vmatpush.msrb.mxu2 %v2036_v26 }
 0x199   :  { %v137_v33 = vpop.f32.mrf.mxu2 }
 0x19a   :  { %v2055_v34 = vadd.f32 %v1756_v32, %v137_v33 }
 0x19c   :  { %1696 = vmatmul.msk.f32.vlgmr.msrb.gmra.mxu3 %vm359_vm5, %v2055_v34 }
 0x19d   :  { %978 = vmatpush.msrb.mxu3 %v2033_v25 }
 0x19f   :  { %979 = vmatpush.msrb.mxu3 %v2036_v26 }
 0x1a1   :  { %v2120_v9 = vpop.f32.mrf.mxu2 }
 0x21f   :  { %v380_v40 = vpop.f32.mrf.mxu3 }
 0x220   :  { %v383_v41 = vadd.f32 %v380_v40, %v196_v39 }
 0x222   :  { %1766 = vtanh.f32 %v383_v41  ;;  %v1697_v43 = vmul.f32 -1.442695, %v383_v41 }
 0x224   :  { %1768 = vpow2.f32 %v1697_v43 }
 0x228   :  { %v1767_v42 = vpop.eup %1766 }
 0x229   :  { %406 = vrot.lane.b32.xlu0 %v1767_v42, %s1963_s14 }
 0x22a   :  { %v1769_v44 = vpop.eup %1768 }
 0x22b   :  { %v387_v45 = vadd.f32 1.0, %v1769_v44 }
 0x22d   :  { %1770 = vrcp.f32 %v387_v45  ;;  %v399_v51 = vand.u32 2147483648, %v387_v45  ;;  %vm393_vm7 = vweird.f32 %v387_v45  ;;  %v397_v52 = vand.u32 2147483647, %v387_v45 }
 0x22f   :  { %v400_v54 = vor.u32 1.1754944e-38, %v399_v51  ;;  %vm398_vm9 = vcmp.eq.f32.partialorder %v397_v52, 8.507059e+37 }
 0x233   :  { %v1771_v46 = vpop.eup %1770 }
 0x234   :  { %v389_v47 = vmul.f32 %v1771_v46, %v387_v45  ;;  %vm394_vm6 = vweird.f32 %v1771_v46 }
 0x235   :  { %vm395_vm8 = vmor %vm393_vm7, %vm394_vm6 }
 0x236   :  { %v390_v48 = vsub.f32 1.0, %v389_v47 }
 0x238   :  { %v391_v49 = vmul.f32 %v1771_v46, %v390_v48 }
 0x23a   :  { %v392_v50 = vadd.f32 %v1771_v46, %v391_v49 }
 0x23c   :  { %v396_v53 = vsel %vm395_vm8, %v1771_v46, %v392_v50 }
 0x23d   :  { %v401_v56 = vsel %vm398_vm9, %v400_v54, %v396_v53 }
 0x23e   :  { %v404_v58 = vmul.f32 0.0, %v401_v56 }
 0x29b   :  { %v407_v55 = vpop.permute.xlu0 %406 }
 0x29c   :  { %v409_v57 = vmul.f32 %v407_v55, %v401_v56 }
 0x29e   :  { %411 = vrot.lane.b32.xlu0 %v409_v57, %s1964_s15 }
 0x310   :  { %v412_v59 = vpop.permute.xlu0 %411 }
 0x311   :  { %v2073_v60 = vadd.f32 %v412_v59, %v404_v58 }
 0x313   :  { %1772 = vtanh.f32 %v2073_v60 }
 0x319   :  { %v1773_v61 = vpop.eup %1772 }
 0x31a   :  { %417 = vrot.lane.b32.xlu1 %v1773_v61, %s1964_s15 }
 0x38c   :  { %v418_v3 = vpop.permute.xlu1 %417 }
 0x38d   :  { %v420_v4 = vmul.f32 %v418_v3, %v401_v56 }
 0x38f   :  { %422 = vrot.lane.b32.xlu1 %v420_v4, %s1965_s20 }
 0x401   :  { %v423_v7 = vpop.permute.xlu1 %422 }
 0x402   :  { %v425_v8 = vsel %vm359_vm5, %v423_v7, %v2055_v34  ;;  %1700 = vmatmul.msk.f32.vlgmr.msra.gmra.mxu2 %vm359_vm5, %v423_v7 }
 0x403   :  { %1698 = vmatmul.msk.f32.vlgmr.msra.gmra.mxu1 %vm426_vm10, %v425_v8  ;;  %1127 = vmatpush.msra.mxu2 %v2033_v25 }
 0x404   :  { %1046 = vmatpush.msra.mxu1 %v2083_v0 }
 0x405   :  { %1128 = vmatpush.msra.mxu2 %v2036_v26 }
 0x406   :  { %1047 = vmatpush.msra.mxu1 %v2087_v1 }
 0x408   :  { %1048 = vmatpush.msra.mxu1 %v2091_v2 }
 0x40a   :  { %1049 = vmatpush.msra.mxu1 %v2097_v5 }
 0x480   :  { %v447_v16 = vpop.f32.mrf.mxu1 }
 0x481   :  { %v448_v17 = vadd.f32 %v2128_v15, %v447_v16 }
 0x483   :  { %v1699_v21 = vmul.f32 -1.442695, %v448_v17 }
 0x485   :  { %v530_v13 = vpop.f32.mrf.mxu2 }
 0x486   :  { %v533_v14 = vadd.f32 %v530_v13, %v219_v12 }
 0x488   :  { %1774 = vtanh.f32 %v533_v14  ;;  %v1701_v20 = vmul.f32 -1.442695, %v533_v14 }
 0x489   :  { %1776 = vtanh.f32 %v448_v17 }
 0x48a   :  { %1778 = vpow2.f32 %v1701_v20 }
 0x48b   :  { %1780 = vpow2.f32 %v1699_v21 }
 0x48e   :  { %v1775_v18 = vpop.eup %1774 }
 0x48f   :  { %556 = vrot.lane.b32.xlu2 %v1775_v18, %s1963_s14  ;;  %v1777_v19 = vpop.eup %1776  ;;  %v242_v18 = vadd.f32 %v2068_v38, %v2061_v36 }
 0x490   :  { %v1779_v22 = vpop.eup %1778 }
 0x491   :  { %v537_v23 = vadd.f32 1.0, %v1779_v22  ;;  %v1781_v24 = vpop.eup %1780 }
 0x492   :  { %v453_v27 = vadd.f32 1.0, %v1781_v24 }
 0x493   :  { %1782 = vrcp.f32 %v537_v23  ;;  %v549_v40 = vand.u32 2147483648, %v537_v23  ;;  %vm543_vm12 = vweird.f32 %v537_v23  ;;  %v547_v41 = vand.u32 2147483647, %v537_v23 }
 0x494   :  { %1784 = vrcp.f32 %v453_v27  ;;  %v465_v49 = vand.u32 2147483648, %v453_v27  ;;  %vm459_vm0 = vweird.f32 %v453_v27  ;;  %v463_v50 = vand.u32 2147483647, %v453_v27 }
 0x495   :  { %v550_v44 = vor.u32 1.1754944e-38, %v549_v40  ;;  %vm548_vm14 = vcmp.eq.f32.partialorder %v547_v41, 8.507059e+37 }
 0x496   :  { %v466_v52 = vor.u32 1.1754944e-38, %v465_v49  ;;  %vm464_vm2 = vcmp.eq.f32.partialorder %v463_v50, 8.507059e+37 }
 0x497   :  { %472 = vrot.lane.b32.xlu2 %v1777_v19, %s1963_s14 }
 0x499   :  { %v1783_v28 = vpop.eup %1782 }
 0x49a   :  { %v539_v29 = vmul.f32 %v1783_v28, %v537_v23  ;;  %v1785_v31 = vpop.eup %1784  ;;  %vm544_vm11 = vweird.f32 %v1783_v28 }
 0x49b   :  { %v455_v33 = vmul.f32 %v1785_v31, %v453_v27  ;;  %vm545_vm13 = vmor %vm543_vm12, %vm544_vm11  ;;  %vm460_vm15 = vweird.f32 %v1785_v31 }
 0x49c   :  { %v540_v30 = vsub.f32 1.0, %v539_v29  ;;  %vm461_vm1 = vmor %vm459_vm0, %vm460_vm15 }
 0x49d   :  { %v456_v39 = vsub.f32 1.0, %v455_v33 }
 0x49e   :  { %v541_v32 = vmul.f32 %v1783_v28, %v540_v30 }
 0x49f   :  { %v457_v43 = vmul.f32 %v1785_v31, %v456_v39 }
 0x4a0   :  { %v542_v35 = vadd.f32 %v1783_v28, %v541_v32 }
 0x4a1   :  { %v458_v48 = vadd.f32 %v1785_v31, %v457_v43 }
 0x4a2   :  { %v546_v42 = vsel %vm545_vm13, %v1783_v28, %v542_v35 }
 0x4a3   :  { %v551_v46 = vsel %vm548_vm14, %v550_v44, %v546_v42  ;;  %v462_v51 = vsel %vm461_vm1, %v1785_v31, %v458_v48 }
 0x4a4   :  { %v467_v54 = vsel %vm464_vm2, %v466_v52, %v462_v51  ;;  %v554_v56 = vmul.f32 %v551_v46, %v2073_v60  ;;  %v1675_v60 = vld [vmem:[%s2439_s0 + $0x6] sm:$0x3] }
 0x4a5   :  { %v470_v59 = vmul.f32 0.0, %v467_v54  ;;  %1687 = vmatmul.msk.f32.vlgmr.msra.gmra.mxu0 %vm170_vm4, %v1675_v60 }
 0x4a6   :  { %595 = vmatpush.msra.mxu0 %v2083_v0 }
 0x4a8   :  { %596 = vmatpush.msra.mxu0 %v2087_v1 }
 0x4aa   :  { %597 = vmatpush.msra.mxu0 %v2091_v2 }
 0x4ac   :  { %598 = vmatpush.msra.mxu0 %v2097_v5 }
 0x4ad   :  { %1695 = vmatmul.msk.f32.vlgmr.msrb.gmra.mxu0 %vm170_vm4, %v1679_v11 }
 0x4ae   :  { %897 = vmatpush.msrb.mxu0 %v2083_v0 }
 0x4b0   :  { %898 = vmatpush.msrb.mxu0 %v2087_v1 }
 0x4b2   :  { %899 = vmatpush.msrb.mxu0 %v2091_v2 }
 0x4b4   :  { %900 = vmatpush.msrb.mxu0 %v2097_v5 }
 0x4e9   :  { %v557_v45 = vpop.permute.xlu2 %556 }
 0x4ea   :  { %v559_v47 = vmul.f32 %v557_v45, %v551_v46 }
 0x4ec   :  { %561 = vrot.lane.b32.xlu0 %v559_v47, %s1964_s15 }
 0x4f1   :  { %v473_v53 = vpop.permute.xlu2 %472 }
 0x4f2   :  { %v475_v55 = vmul.f32 %v473_v53, %v467_v54 }
 0x4f4   :  { %477 = vrot.lane.b32.xlu1 %v475_v55, %s1964_s15 }
 0x522   :  { %v2174_v16 = vpop.f32.mrf.mxu0 }
 0x52a   :  { %v2176_v17 = vpop.f32.mrf.mxu0 }
 0x55e   :  { %v562_v57 = vpop.permute.xlu0 %561 }
 0x55f   :  { %v2136_v58 = vadd.f32 %v562_v57, %v554_v56 }
 0x561   :  { %1786 = vtanh.f32 %v2136_v58 }
 0x566   :  { %v478_v61 = vpop.permute.xlu1 %477 }
 0x567   :  { %v1787_v62 = vpop.eup %1786  ;;  %v2139_v63 = vadd.f32 %v478_v61, %v470_v59 }
 0x568   :  { %567 = vrot.lane.b32.xlu2 %v1787_v62, %s1964_s15 }
 0x569   :  { %1788 = vtanh.f32 %v2139_v63 }
 0x56f   :  { %v1789_v3 = vpop.eup %1788 }
 0x570   :  { %483 = vrot.lane.b32.xlu0 %v1789_v3, %s1964_s15 }
 0x5c2   :  { %v568_v4 = vpop.permute.xlu2 %567 }
 0x5c3   :  { %v570_v6 = vmul.f32 %v568_v4, %v551_v46 }
 0x5c5   :  { %572 = vrot.lane.b32.xlu1 %v570_v6, %s1965_s20 }
 0x5e2   :  { %v484_v7 = vpop.permute.xlu0 %483 }
 0x5e3   :  { %v2153_v8 = vmul.f32 %v484_v7, %v467_v54 }
 0x5e5   :  { %576 = vrot.lane.b32.xlu2 %v2153_v8, %s1966_s1 }
 0x637   :  { %v573_v12 = vpop.permute.xlu1 %572 }
 0x638   :  { %1704 = vmatmul.msk.f32.vlgmr.msra.gmra.mxu3 %vm359_vm5, %v573_v12 }
 0x639   :  { %1276 = vmatpush.msra.mxu3 %v2033_v25 }
 0x63b   :  { %1277 = vmatpush.msra.mxu3 %v2036_v26 }
 0x63f   :  { %v577_v13 = vpop.permute.xlu2 %576 }
 0x640   :  { %v579_v14 = vsel %vm359_vm5, %v573_v12, %v577_v13 }
 0x641   :  { %1702 = vmatmul.msk.f32.vlgmr.msra.gmra.mxu0 %vm426_vm10, %v579_v14 }
 0x642   :  { %1195 = vmatpush.msra.mxu0 %v2083_v0 }
 0x644   :  { %1196 = vmatpush.msra.mxu0 %v2087_v1 }
 0x646   :  { %1197 = vmatpush.msra.mxu0 %v2091_v2 }
 0x648   :  { %1198 = vmatpush.msra.mxu0 %v2097_v5 }
 0x6bb   :  { %v683_v19 = vpop.f32.mrf.mxu3 }
 0x6bc   :  { %v686_v20 = vadd.f32 %v683_v19, %v242_v18 }
 0x6be   :  { %1790 = vtanh.f32 %v686_v20  ;;  %v600_v21 = vpop.f32.mrf.mxu0  ;;  %v1705_v27 = vmul.f32 -1.442695, %v686_v20 }
 0x6bf   :  { %v601_v22 = vadd.f32 %v2128_v15, %v600_v21 }
 0x6c1   :  { %1792 = vtanh.f32 %v601_v22  ;;  %v1703_v28 = vmul.f32 -1.442695, %v601_v22  ;;  %v265_v22 = vadd.f32 %v2068_v38, %v2174_v16 }
 0x6c2   :  { %1794 = vpow2.f32 %v1705_v27 }
 0x6c3   :  { %1796 = vpow2.f32 %v1703_v28 }
 0x6c4   :  { %v1791_v23 = vpop.eup %1790 }
 0x6c5   :  { %709 = vrot.lane.b32.xlu0 %v1791_v23, %s1963_s14 }
 0x6c7   :  { %v1793_v24 = vpop.eup %1792 }
 0x6c8   :  { %625 = vrot.lane.b32.xlu1 %v1793_v24, %s1963_s14  ;;  %v1795_v29 = vpop.eup %1794 }
 0x6c9   :  { %v1797_v30 = vpop.eup %1796  ;;  %v690_v36 = vadd.f32 1.0, %v1795_v29 }
 0x6ca   :  { %v606_v31 = vadd.f32 1.0, %v1797_v30 }
 0x6cb   :  { %1798 = vrcp.f32 %v690_v36  ;;  %v702_v45 = vand.u32 2147483648, %v690_v36  ;;  %vm696_vm4 = vweird.f32 %v690_v36  ;;  %v700_v46 = vand.u32 2147483647, %v690_v36 }
 0x6cc   :  { %1800 = vrcp.f32 %v606_v31  ;;  %v618_v49 = vand.u32 2147483648, %v606_v31  ;;  %vm612_vm8 = vweird.f32 %v606_v31  ;;  %v616_v51 = vand.u32 2147483647, %v606_v31 }
 0x6cd   :  { %v703_v50 = vor.u32 1.1754944e-38, %v702_v45  ;;  %vm701_vm9 = vcmp.eq.f32.partialorder %v700_v46, 8.507059e+37 }
 0x6ce   :  { %v619_v56 = vor.u32 1.1754944e-38, %v618_v49  ;;  %vm617_vm12 = vcmp.eq.f32.partialorder %v616_v51, 8.507059e+37 }
 0x6d1   :  { %v1799_v32 = vpop.eup %1798 }
 0x6d2   :  { %v1801_v33 = vpop.eup %1800  ;;  %v692_v35 = vmul.f32 %v1799_v32, %v690_v36  ;;  %vm697_vm3 = vweird.f32 %v1799_v32 }
 0x6d3   :  { %v608_v39 = vmul.f32 %v1801_v33, %v606_v31  ;;  %vm698_vm6 = vmor %vm696_vm4, %vm697_vm3  ;;  %vm613_vm7 = vweird.f32 %v1801_v33 }
 0x6d4   :  { %v693_v40 = vsub.f32 1.0, %v692_v35  ;;  %vm614_vm11 = vmor %vm612_vm8, %vm613_vm7 }
 0x6d5   :  { %v609_v41 = vsub.f32 1.0, %v608_v39 }
 0x6d6   :  { %v694_v42 = vmul.f32 %v1799_v32, %v693_v40 }
 0x6d7   :  { %v610_v43 = vmul.f32 %v1801_v33, %v609_v41 }
 0x6d8   :  { %v695_v44 = vadd.f32 %v1799_v32, %v694_v42 }
 0x6d9   :  { %v611_v47 = vadd.f32 %v1801_v33, %v610_v43 }
 0x6da   :  { %v699_v48 = vsel %vm698_vm6, %v1799_v32, %v695_v44 }
 0x6db   :  { %v704_v52 = vsel %vm701_vm9, %v703_v50, %v699_v48  ;;  %v615_v54 = vsel %vm614_vm11, %v1801_v33, %v611_v47 }
 0x6dc   :  { %v620_v59 = vsel %vm617_vm12, %v619_v56, %v615_v54  ;;  %v707_v62 = vmul.f32 %v704_v52, %v2136_v58 }
 0x6dd   :  { %v623_v60 = vmul.f32 %v620_v59, %v2139_v63 }
 0x737   :  { %v710_v53 = vpop.permute.xlu0 %709 }
 0x738   :  { %v712_v55 = vmul.f32 %v710_v53, %v704_v52 }
 0x73a   :  { %v626_v57 = vpop.permute.xlu1 %625  ;;  %714 = vrot.lane.b32.xlu2 %v712_v55, %s1964_s15 }
 0x73b   :  { %v628_v61 = vmul.f32 %v626_v57, %v620_v59 }
 0x73d   :  { %630 = vrot.lane.b32.xlu0 %v628_v61, %s1964_s15 }
 0x794   :  { %v715_v3 = vpop.permute.xlu2 %714 }
 0x795   :  { %v2186_v4 = vadd.f32 %v715_v3, %v707_v62 }
 0x797   :  { %1802 = vtanh.f32 %v2186_v4 }
 0x79d   :  { %v1803_v6 = vpop.eup %1802 }
 0x79e   :  { %720 = vrot.lane.b32.xlu1 %v1803_v6, %s1964_s15 }
 0x7af   :  { %v631_v7 = vpop.permute.xlu0 %630 }
 0x7b0   :  { %v2191_v11 = vadd.f32 %v631_v7, %v623_v60 }
 0x7b2   :  { %1804 = vtanh.f32 %v2191_v11 }
 0x7b8   :  { %v1805_v12 = vpop.eup %1804 }
 0x7b9   :  { %636 = vrot.lane.b32.xlu2 %v1805_v12, %s1964_s15 }
 0x810   :  { %v721_v13 = vpop.permute.xlu1 %720 }
 0x811   :  { %v723_v58 = vmul.f32 %v721_v13, %v704_v52 }
 0x813   :  { %725 = vrot.lane.b32.xlu0 %v723_v58, %s1965_s20  ;;  %v637_v14 = vpop.permute.xlu2 %636 }
 0x814   :  { %v2196_v18 = vmul.f32 %v637_v14, %v620_v59 }
 0x816   :  { %729 = vrot.lane.b32.xlu1 %v2196_v18, %s1966_s1 }
 0x885   :  { %v726_v19 = vpop.permute.xlu0 %725 }
 0x886   :  { %1708 = vmatmul.msk.f32.vlgmr.msrb.gmra.mxu2 %vm359_vm5, %v726_v19 }
 0x887   :  { %1425 = vmatpush.msrb.mxu2 %v2033_v25 }
 0x888   :  { %v730_v63 = vpop.permute.xlu1 %729 }
 0x889   :  { %v732_v20 = vsel %vm359_vm5, %v726_v19, %v730_v63  ;;  %1426 = vmatpush.msrb.mxu2 %v2036_v26 }
 0x88a   :  { %1706 = vmatmul.msk.f32.vlgmr.msrb.gmra.mxu1 %vm426_vm10, %v732_v20 }
 0x88b   :  { %1344 = vmatpush.msrb.mxu1 %v2083_v0 }
 0x88d   :  { %1345 = vmatpush.msrb.mxu1 %v2087_v1 }
 0x88f   :  { %1346 = vmatpush.msrb.mxu1 %v2091_v2 }
 0x891   :  { %1347 = vmatpush.msrb.mxu1 %v2097_v5 }
 0x907   :  { %v753_v21 = vpop.f32.mrf.mxu1 }
 0x908   :  { %v754_v25 = vadd.f32 %v2128_v15, %v753_v21 }
 0x909   :  { %v832_v23 = vpop.f32.mrf.mxu2 }
 0x90a   :  { %1806 = vtanh.f32 %v754_v25  ;;  %v835_v24 = vadd.f32 %v832_v23, %v265_v22  ;;  %v1707_v36 = vmul.f32 -1.442695, %v754_v25  ;;  %v288_v22 = vadd.f32 %v2068_v38, %v2063_v37 }
 0x90c   :  { %1808 = vtanh.f32 %v835_v24  ;;  %v1709_v28 = vmul.f32 -1.442695, %v835_v24 }
 0x90e   :  { %1810 = vpow2.f32 %v1709_v28 }
 0x910   :  { %v1807_v26 = vpop.eup %1806 }
 0x911   :  { %778 = vrot.lane.b32.xlu0 %v1807_v26, %s1963_s14 }
 0x912   :  { %v1809_v27 = vpop.eup %1808 }
 0x913   :  { %858 = vrot.lane.b32.xlu2 %v1809_v27, %s1963_s14 }
 0x914   :  { %v1811_v29 = vpop.eup %1810 }
 0x915   :  { %v839_v30 = vadd.f32 1.0, %v1811_v29 }
 0x917   :  { %1812 = vrcp.f32 %v839_v30  ;;  %v851_v41 = vand.u32 2147483648, %v839_v30  ;;  %vm845_vm14 = vweird.f32 %v839_v30  ;;  %v849_v42 = vand.u32 2147483647, %v839_v30 }
 0x918   :  { %1814 = vpow2.f32 %v1707_v36 }
 0x919   :  { %v852_v44 = vor.u32 1.1754944e-38, %v851_v41  ;;  %vm850_vm0 = vcmp.eq.f32.partialorder %v849_v42, 8.507059e+37 }
 0x91d   :  { %v1813_v31 = vpop.eup %1812 }
 0x91e   :  { %v841_v16 = vmul.f32 %v1813_v31, %v839_v30  ;;  %v1815_v33 = vpop.eup %1814  ;;  %vm846_vm13 = vweird.f32 %v1813_v31 }
 0x91f   :  { %v759_v35 = vadd.f32 1.0, %v1815_v33  ;;  %vm847_vm15 = vmor %vm845_vm14, %vm846_vm13 }
 0x920   :  { %v842_v32 = vsub.f32 1.0, %v841_v16 }
 0x921   :  { %1816 = vrcp.f32 %v759_v35  ;;  %v771_v53 = vand.u32 2147483648, %v759_v35  ;;  %vm765_vm2 = vweird.f32 %v759_v35  ;;  %v769_v54 = vand.u32 2147483647, %v759_v35 }
 0x922   :  { %v843_v39 = vmul.f32 %v1813_v31, %v842_v32 }
 0x923   :  { %v772_v56 = vor.u32 1.1754944e-38, %v771_v53  ;;  %vm770_vm4 = vcmp.eq.f32.partialorder %v769_v54, 8.507059e+37 }
 0x924   :  { %v844_v40 = vadd.f32 %v1813_v31, %v843_v39 }
 0x926   :  { %v848_v43 = vsel %vm847_vm15, %v1813_v31, %v844_v40 }
 0x927   :  { %v1817_v45 = vpop.eup %1816  ;;  %v853_v47 = vsel %vm850_vm0, %v852_v44, %v848_v43 }
 0x928   :  { %v761_v49 = vmul.f32 %v1817_v45, %v759_v35  ;;  %vm766_vm1 = vweird.f32 %v1817_v45  ;;  %v856_v60 = vmul.f32 %v853_v47, %v2186_v4 }
 0x929   :  { %vm767_vm3 = vmor %vm765_vm2, %vm766_vm1 }
 0x92a   :  { %v762_v50 = vsub.f32 1.0, %v761_v49 }
 0x92c   :  { %v763_v51 = vmul.f32 %v1817_v45, %v762_v50 }
 0x92e   :  { %v764_v52 = vadd.f32 %v1817_v45, %v763_v51 }
 0x930   :  { %v768_v55 = vsel %vm767_vm3, %v1817_v45, %v764_v52 }
 0x931   :  { %v773_v59 = vsel %vm770_vm4, %v772_v56, %v768_v55 }
 0x932   :  { %v776_v62 = vmul.f32 %v773_v59, %v2191_v11 }
 0x96d   :  { %v859_v46 = vpop.permute.xlu2 %858 }
 0x96e   :  { %v861_v48 = vmul.f32 %v859_v46, %v853_v47 }
 0x970   :  { %863 = vrot.lane.b32.xlu1 %v861_v48, %s1964_s15 }
 0x983   :  { %v779_v57 = vpop.permute.xlu0 %778 }
 0x984   :  { %v781_v61 = vmul.f32 %v779_v57, %v773_v59 }
 0x986   :  { %783 = vrot.lane.b32.xlu2 %v781_v61, %s1964_s15 }
 0x9e0   :  { %v784_v3 = vpop.permute.xlu2 %783 }
 0x9e1   :  { %v2217_v6 = vadd.f32 %v784_v3, %v776_v62 }
 0x9e2   :  { %v864_v7 = vpop.permute.xlu1 %863 }
 0x9e3   :  { %1818 = vtanh.f32 %v2217_v6  ;;  %v2221_v12 = vadd.f32 %v864_v7, %v856_v60 }
 0x9e5   :  { %1820 = vtanh.f32 %v2221_v12 }
 0x9e9   :  { %v1819_v13 = vpop.eup %1818 }
 0x9ea   :  { %789 = vrot.lane.b32.xlu1 %v1819_v13, %s1964_s15 }
 0x9eb   :  { %v1821_v58 = vpop.eup %1820 }
 0x9ec   :  { %869 = vrot.lane.b32.xlu0 %v1821_v58, %s1964_s15 }
 0xa5c   :  { %v790_v14 = vpop.permute.xlu1 %789 }
 0xa5d   :  { %v2226_v11 = vmul.f32 %v790_v14, %v773_v59 }
 0xa5e   :  { %v870_v19 = vpop.permute.xlu0 %869 }
 0xa5f   :  { %878 = vrot.lane.b32.xlu0 %v2226_v11, %s1966_s1  ;;  %v872_v4 = vmul.f32 %v870_v19, %v853_v47 }
 0xa61   :  { %874 = vrot.lane.b32.xlu2 %v872_v4, %s1965_s20 }
 0xabb   :  { %v875_v63 = vpop.permute.xlu2 %874 }
 0xabc   :  { %1712 = vmatmul.msk.f32.vlgmr.msrb.gmra.mxu3 %vm359_vm5, %v875_v63 }
 0xad1   :  { %v879_v20 = vpop.permute.xlu0 %878 }
 0xad2   :  { %v881_v21 = vsel %vm359_vm5, %v875_v63, %v879_v20 }
 0xad3   :  { %1710 = vmatmul.msk.f32.vlgmr.msrb.gmra.mxu0 %vm426_vm10, %v881_v21  ;;  %v311_v21 = vadd.f32 %v2068_v38, %v2122_v10 }
 0xad4   :  { %1493 = vmatpush.msrb.mxu0 %v2083_v0 }
 0xad6   :  { %1494 = vmatpush.msrb.mxu0 %v2087_v1 }
 0xad8   :  { %1495 = vmatpush.msrb.mxu0 %v2091_v2 }
 0xada   :  { %1496 = vmatpush.msrb.mxu0 %v2097_v5 }
 0xb3f   :  { %v981_v25 = vpop.f32.mrf.mxu3 }
 0xb40   :  { %v984_v23 = vadd.f32 %v981_v25, %v288_v22 }
 0xb42   :  { %1822 = vtanh.f32 %v984_v23  ;;  %v1713_v2 = vmul.f32 -1.442695, %v984_v23 }
 0xb48   :  { %v1823_v24 = vpop.eup %1822 }
 0xb49   :  { %1007 = vrot.lane.b32.xlu1 %v1823_v24, %s1963_s14 }
 0xb50   :  { %v902_v26 = vpop.f32.mrf.mxu0 }
 0xb51   :  { %v903_v27 = vadd.f32 %v2128_v15, %v902_v26 }
 0xb53   :  { %1824 = vtanh.f32 %v903_v27  ;;  %v1711_v1 = vmul.f32 -1.442695, %v903_v27 }
 0xb55   :  { %1826 = vpow2.f32 %v1711_v1 }
 0xb56   :  { %1828 = vpow2.f32 %v1713_v2 }
 0xb59   :  { %v1825_v0 = vpop.eup %1824 }
 0xb5a   :  { %927 = vrot.lane.b32.xlu2 %v1825_v0, %s1963_s14 }
 0xb5b   :  { %v1827_v5 = vpop.eup %1826 }
 0xb5c   :  { %v908_v28 = vadd.f32 1.0, %v1827_v5  ;;  %v1829_v37 = vpop.eup %1828 }
 0xb5d   :  { %v988_v29 = vadd.f32 1.0, %v1829_v37 }
 0xb5e   :  { %1830 = vrcp.f32 %v908_v28  ;;  %v920_v40 = vand.u32 2147483648, %v908_v28  ;;  %vm914_vm7 = vweird.f32 %v908_v28  ;;  %v918_v41 = vand.u32 2147483647, %v908_v28 }
 0xb5f   :  { %1832 = vrcp.f32 %v988_v29  ;;  %v1000_v49 = vand.u32 2147483648, %v988_v29  ;;  %vm994_vm12 = vweird.f32 %v988_v29  ;;  %v998_v50 = vand.u32 2147483647, %v988_v29 }
 0xb60   :  { %v921_v44 = vor.u32 1.1754944e-38, %v920_v40  ;;  %vm919_vm9 = vcmp.eq.f32.partialorder %v918_v41, 8.507059e+37 }
 0xb61   :  { %v1001_v52 = vor.u32 1.1754944e-38, %v1000_v49  ;;  %vm999_vm14 = vcmp.eq.f32.partialorder %v998_v50, 8.507059e+37 }
 0xb64   :  { %v1831_v30 = vpop.eup %1830 }
 0xb65   :  { %v910_v36 = vmul.f32 %v1831_v30, %v908_v28  ;;  %v1833_v16 = vpop.eup %1832  ;;  %vm915_vm6 = vweird.f32 %v1831_v30 }
 0xb66   :  { %v990_v33 = vmul.f32 %v1833_v16, %v988_v29  ;;  %vm916_vm8 = vmor %vm914_vm7, %vm915_vm6  ;;  %vm995_vm11 = vweird.f32 %v1833_v16 }
 0xb67   :  { %v911_v31 = vsub.f32 1.0, %v910_v36  ;;  %vm996_vm13 = vmor %vm994_vm12, %vm995_vm11 }
 0xb68   :  { %v991_v39 = vsub.f32 1.0, %v990_v33 }
 0xb69   :  { %v912_v32 = vmul.f32 %v1831_v30, %v911_v31 }
 0xb6a   :  { %v992_v43 = vmul.f32 %v1833_v16, %v991_v39 }
 0xb6b   :  { %v913_v35 = vadd.f32 %v1831_v30, %v912_v32 }
 0xb6c   :  { %v993_v48 = vadd.f32 %v1833_v16, %v992_v43 }
 0xb6d   :  { %v917_v42 = vsel %vm916_vm8, %v1831_v30, %v913_v35 }
 0xb6e   :  { %v922_v46 = vsel %vm919_vm9, %v921_v44, %v917_v42  ;;  %v997_v51 = vsel %vm996_vm13, %v1833_v16, %v993_v48 }
 0xb6f   :  { %v1002_v53 = vsel %vm999_vm14, %v1001_v52, %v997_v51  ;;  %v925_v56 = vmul.f32 %v922_v46, %v2217_v6 }
 0xb70   :  { %v1005_v61 = vmul.f32 %v1002_v53, %v2221_v12 }
 0xbb4   :  { %v928_v45 = vpop.permute.xlu2 %927 }
 0xbb5   :  { %v930_v47 = vmul.f32 %v928_v45, %v922_v46 }
 0xbb7   :  { %932 = vrot.lane.b32.xlu1 %v930_v47, %s1964_s15 }
 0xbbb   :  { %v1008_v54 = vpop.permute.xlu1 %1007 }
 0xbbc   :  { %v1010_v55 = vmul.f32 %v1008_v54, %v1002_v53 }
 0xbbe   :  { %1012 = vrot.lane.b32.xlu0 %v1010_v55, %s1964_s15 }
 0xc29   :  { %v933_v57 = vpop.permute.xlu1 %932 }
 0xc2a   :  { %v2246_v59 = vadd.f32 %v933_v57, %v925_v56 }
 0xc2c   :  { %1834 = vtanh.f32 %v2246_v59 }
 0xc30   :  { %v1013_v62 = vpop.permute.xlu0 %1012 }
 0xc31   :  { %v2250_v60 = vadd.f32 %v1013_v62, %v1005_v61 }
 0xc32   :  { %v1835_v3 = vpop.eup %1834 }
 0xc33   :  { %938 = vrot.lane.b32.xlu0 %v1835_v3, %s1964_s15  ;;  %1836 = vtanh.f32 %v2250_v60 }
 0xc39   :  { %v1837_v7 = vpop.eup %1836 }
 0xc3a   :  { %1018 = vrot.lane.b32.xlu2 %v1837_v7, %s1964_s15 }
 0xc94   :  { %v1019_v13 = vpop.permute.xlu2 %1018 }
 0xc95   :  { %v1021_v6 = vmul.f32 %v1019_v13, %v1002_v53 }
 0xc97   :  { %1023 = vrot.lane.b32.xlu1 %v1021_v6, %s1965_s20 }
 0xca5   :  { %v939_v58 = vpop.permute.xlu0 %938 }
 0xca6   :  { %v2256_v14 = vmul.f32 %v939_v58, %v922_v46 }
 0xca8   :  { %1027 = vrot.lane.b32.xlu2 %v2256_v14, %s1966_s1 }
 0xd02   :  { %v1028_v12 = vpop.permute.xlu2 %1027 }
 0xd09   :  { %v1024_v19 = vpop.permute.xlu1 %1023 }
 0xd0a   :  { %v1030_v4 = vsel %vm359_vm5, %v1024_v19, %v1028_v12  ;;  %1716 = vmatmul.msk.f32.vlgmr.msra.gmra.mxu2 %vm359_vm5, %v1024_v19 }
 0xd0b   :  { %1714 = vmatmul.msk.f32.vlgmr.msra.gmra.mxu1 %vm426_vm10, %v1030_v4  ;;  %v334_v4 = vadd.f32 %v2068_v38, %v2120_v9 }
 0xd88   :  { %v1051_v63 = vpop.f32.mrf.mxu1 }
 0xd89   :  { %v1052_v20 = vadd.f32 %v2128_v15, %v1051_v63 }
 0xd8b   :  { %1838 = vtanh.f32 %v1052_v20  ;;  %v1715_v26 = vmul.f32 -1.442695, %v1052_v20 }
 0xd8d   :  { %v1130_v22 = vpop.f32.mrf.mxu2 }
 0xd8e   :  { %v1133_v25 = vadd.f32 %v1130_v22, %v311_v21 }
 0xd90   :  { %1840 = vtanh.f32 %v1133_v25  ;;  %v1717_v27 = vmul.f32 -1.442695, %v1133_v25 }
 0xd91   :  { %v1839_v23 = vpop.eup %1838  ;;  %1842 = vpow2.f32 %v1715_v26 }
 0xd92   :  { %1076 = vrot.lane.b32.xlu1 %v1839_v23, %s1963_s14  ;;  %1844 = vpow2.f32 %v1717_v27 }
 0xd96   :  { %v1841_v24 = vpop.eup %1840 }
 0xd97   :  { %1156 = vrot.lane.b32.xlu0 %v1841_v24, %s1963_s14  ;;  %v1843_v0 = vpop.eup %1842 }
 0xd98   :  { %v1057_v1 = vadd.f32 1.0, %v1843_v0  ;;  %v1845_v2 = vpop.eup %1844 }
 0xd99   :  { %v1137_v5 = vadd.f32 1.0, %v1845_v2 }
 0xd9a   :  { %1846 = vrcp.f32 %v1057_v1  ;;  %v1069_v32 = vand.u32 2147483648, %v1057_v1  ;;  %vm1063_vm0 = vweird.f32 %v1057_v1  ;;  %v1067_v35 = vand.u32 2147483647, %v1057_v1 }
 0xd9b   :  { %1848 = vrcp.f32 %v1137_v5  ;;  %v1149_v42 = vand.u32 2147483648, %v1137_v5  ;;  %vm1143_vm4 = vweird.f32 %v1137_v5  ;;  %v1147_v45 = vand.u32 2147483647, %v1137_v5 }
 0xd9c   :  { %v1070_v40 = vor.u32 1.1754944e-38, %v1069_v32  ;;  %vm1068_vm3 = vcmp.eq.f32.partialorder %v1067_v35, 8.507059e+37 }
 0xd9d   :  { %v1150_v48 = vor.u32 1.1754944e-38, %v1149_v42  ;;  %vm1148_vm7 = vcmp.eq.f32.partialorder %v1147_v45, 8.507059e+37 }
 0xda0   :  { %v1847_v10 = vpop.eup %1846 }
 0xda1   :  { %v1059_v28 = vmul.f32 %v1847_v10, %v1057_v1  ;;  %v1849_v37 = vpop.eup %1848  ;;  %vm1064_vm15 = vweird.f32 %v1847_v10 }
 0xda2   :  { %v1139_v30 = vmul.f32 %v1849_v37, %v1137_v5  ;;  %vm1065_vm1 = vmor %vm1063_vm0, %vm1064_vm15  ;;  %vm1144_vm2 = vweird.f32 %v1849_v37 }
 0xda3   :  { %v1060_v29 = vsub.f32 1.0, %v1059_v28  ;;  %vm1145_vm6 = vmor %vm1143_vm4, %vm1144_vm2 }
 0xda4   :  { %v1140_v31 = vsub.f32 1.0, %v1139_v30 }
 0xda5   :  { %v1061_v36 = vmul.f32 %v1847_v10, %v1060_v29 }
 0xda6   :  { %v1141_v33 = vmul.f32 %v1849_v37, %v1140_v31 }
 0xda7   :  { %v1062_v16 = vadd.f32 %v1847_v10, %v1061_v36 }
 0xda8   :  { %v1142_v41 = vadd.f32 %v1849_v37, %v1141_v33 }
 0xda9   :  { %v1066_v39 = vsel %vm1065_vm1, %v1847_v10, %v1062_v16 }
 0xdaa   :  { %v1071_v44 = vsel %vm1068_vm3, %v1070_v40, %v1066_v39  ;;  %v1146_v47 = vsel %vm1145_vm6, %v1849_v37, %v1142_v41 }
 0xdab   :  { %v1151_v50 = vsel %vm1148_vm7, %v1150_v48, %v1146_v47  ;;  %v1074_v56 = vmul.f32 %v1071_v44, %v2246_v59 }
 0xdac   :  { %v1154_v52 = vmul.f32 %v1151_v50, %v2250_v60 }
 0xe04   :  { %v1077_v43 = vpop.permute.xlu1 %1076 }
 0xe05   :  { %v1079_v46 = vmul.f32 %v1077_v43, %v1071_v44 }
 0xe07   :  { %1081 = vrot.lane.b32.xlu0 %v1079_v46, %s1964_s15 }
 0xe09   :  { %v1157_v49 = vpop.permute.xlu0 %1156 }
 0xe0a   :  { %v1159_v51 = vmul.f32 %v1157_v49, %v1151_v50 }
 0xe0c   :  { %1161 = vrot.lane.b32.xlu2 %v1159_v51, %s1964_s15 }
 0xe66   :  { %v1162_v53 = vpop.permute.xlu2 %1161 }
 0xe67   :  { %v2271_v54 = vadd.f32 %v1162_v53, %v1154_v52 }
 0xe69   :  { %1850 = vtanh.f32 %v2271_v54 }
 0xe6f   :  { %v1851_v55 = vpop.eup %1850 }
 0xe70   :  { %1167 = vrot.lane.b32.xlu1 %v1851_v55, %s1964_s15 }
 0xe79   :  { %v1082_v57 = vpop.permute.xlu0 %1081 }
 0xe7a   :  { %v2276_v61 = vadd.f32 %v1082_v57, %v1074_v56 }
 0xe7c   :  { %1852 = vtanh.f32 %v2276_v61 }
 0xe82   :  { %v1853_v62 = vpop.eup %1852 }
 0xe83   :  { %1087 = vrot.lane.b32.xlu2 %v1853_v62, %s1964_s15 }
 0xedd   :  { %v1088_v3 = vpop.permute.xlu2 %1087 }
 0xede   :  { %v2280_v60 = vmul.f32 %v1088_v3, %v1071_v44 }
 0xee0   :  { %1176 = vrot.lane.b32.xlu1 %v2280_v60, %s1966_s1 }
 0xee2   :  { %v1168_v7 = vpop.permute.xlu1 %1167 }
 0xee3   :  { %v1170_v13 = vmul.f32 %v1168_v7, %v1151_v50 }
 0xee5   :  { %1172 = vrot.lane.b32.xlu0 %v1170_v13, %s1965_s20  ;;  %v1898_v13 = vld [vmem:[%s2443_s4 + $0x3] ss:$0 sm:$0xff] }
 0xf52   :  { %v1177_v6 = vpop.permute.xlu1 %1176 }
 0xf57   :  { %v1173_v59 = vpop.permute.xlu0 %1172 }
 0xf58   :  { %v1179_v58 = vsel %vm359_vm5, %v1173_v59, %v1177_v6  ;;  %1720 = vmatmul.msk.f32.vlgmr.msra.gmra.mxu3 %vm359_vm5, %v1173_v59  ;;  %v357_v6 = vadd.f32 %v1898_v13, %v2176_v17 }
 0xf59   :  { %1718 = vmatmul.msk.f32.vlgmr.msra.gmra.mxu0 %vm426_vm10, %v1179_v58 }
 0xfd6   :  { %v1200_v12 = vpop.f32.mrf.mxu0 }
 0xfd7   :  { %v1201_v19 = vadd.f32 %v2128_v15, %v1200_v12 }
 0xfd9   :  { %1854 = vtanh.f32 %v1201_v19  ;;  %v1719_v26 = vmul.f32 -1.442695, %v1201_v19 }
 0xfdb   :  { %v1279_v63 = vpop.f32.mrf.mxu3 }
 0xfdc   :  { %v1282_v20 = vadd.f32 %v1279_v63, %v334_v4 }
 0xfde   :  { %1856 = vtanh.f32 %v1282_v20  ;;  %v1721_v25 = vmul.f32 -1.442695, %v1282_v20 }
 0xfdf   :  { %v1855_v21 = vpop.eup %1854 }
 0xfe0   :  { %1225 = vrot.lane.b32.xlu0 %v1855_v21, %s1963_s14  ;;  %1858 = vpow2.f32 %v1721_v25 }
 0xfe4   :  { %v1857_v22 = vpop.eup %1856 }
 0xfe5   :  { %1305 = vrot.lane.b32.xlu2 %v1857_v22, %s1963_s14 }
 0xfe6   :  { %v1859_v23 = vpop.eup %1858 }
 0xfe7   :  { %v1286_v24 = vadd.f32 1.0, %v1859_v23 }
 0xfe9   :  { %1860 = vrcp.f32 %v1286_v24  ;;  %v1298_v10 = vand.u32 2147483648, %v1286_v24  ;;  %vm1292_vm9 = vweird.f32 %v1286_v24  ;;  %v1296_v28 = vand.u32 2147483647, %v1286_v24 }
 0xfea   :  { %1862 = vpow2.f32 %v1719_v26 }
 0xfeb   :  { %v1299_v30 = vor.u32 1.1754944e-38, %v1298_v10  ;;  %vm1297_vm12 = vcmp.eq.f32.partialorder %v1296_v28, 8.507059e+37 }
 0xfef   :  { %v1861_v27 = vpop.eup %1860 }
 0xff0   :  { %v1288_v0 = vmul.f32 %v1861_v27, %v1286_v24  ;;  %v1863_v1 = vpop.eup %1862  ;;  %vm1293_vm8 = vweird.f32 %v1861_v27 }
 0xff1   :  { %v1206_v9 = vadd.f32 1.0, %v1863_v1  ;;  %vm1294_vm11 = vmor %vm1292_vm9, %vm1293_vm8 }
 0xff2   :  { %v1289_v38 = vsub.f32 1.0, %v1288_v0 }
 0xff3   :  { %1864 = vrcp.f32 %v1206_v9  ;;  %v1218_v40 = vand.u32 2147483648, %v1206_v9  ;;  %vm1212_vm14 = vweird.f32 %v1206_v9  ;;  %v1216_v41 = vand.u32 2147483647, %v1206_v9 }
 0xff4   :  { %v1290_v2 = vmul.f32 %v1861_v27, %v1289_v38 }
 0xff5   :  { %v1219_v43 = vor.u32 1.1754944e-38, %v1218_v40  ;;  %vm1217_vm0 = vcmp.eq.f32.partialorder %v1216_v41, 8.507059e+37 }
 0xff6   :  { %v1291_v5 = vadd.f32 %v1861_v27, %v1290_v2 }
 0xff8   :  { %v1295_v29 = vsel %vm1294_vm11, %v1861_v27, %v1291_v5 }
 0xff9   :  { %v1865_v37 = vpop.eup %1864  ;;  %v1300_v36 = vsel %vm1297_vm12, %v1299_v30, %v1295_v29 }
 0xffa   :  { %v1208_v16 = vmul.f32 %v1865_v37, %v1206_v9  ;;  %vm1213_vm13 = vweird.f32 %v1865_v37  ;;  %v1303_v50 = vmul.f32 %v1300_v36, %v2271_v54 }
 0xffb   :  { %vm1214_vm15 = vmor %vm1212_vm14, %vm1213_vm13 }
 0xffc   :  { %v1209_v33 = vsub.f32 1.0, %v1208_v16 }
 0xffe   :  { %v1210_v35 = vmul.f32 %v1865_v37, %v1209_v33 }
0x1000   :  { %v1211_v39 = vadd.f32 %v1865_v37, %v1210_v35 }
0x1002   :  { %v1215_v42 = vsel %vm1214_vm15, %v1865_v37, %v1211_v39 }
0x1003   :  { %v1220_v45 = vsel %vm1217_vm0, %v1219_v43, %v1215_v42 }
0x1004   :  { %v1223_v47 = vmul.f32 %v1220_v45, %v2276_v61 }
0x103f   :  { %v1306_v31 = vpop.permute.xlu2 %1305 }
0x1040   :  { %v1308_v32 = vmul.f32 %v1306_v31, %v1300_v36 }
0x1042   :  { %1310 = vrot.lane.b32.xlu1 %v1308_v32, %s1964_s15 }
0x1052   :  { %v1226_v44 = vpop.permute.xlu0 %1225 }
0x1053   :  { %v1228_v46 = vmul.f32 %v1226_v44, %v1220_v45 }
0x1055   :  { %1230 = vrot.lane.b32.xlu2 %v1228_v46, %s1964_s15 }
0x10af   :  { %v1231_v48 = vpop.permute.xlu2 %1230 }
0x10b0   :  { %v2296_v49 = vadd.f32 %v1231_v48, %v1223_v47 }
0x10b2   :  { %1866 = vtanh.f32 %v2296_v49 }
0x10b4   :  { %v1311_v51 = vpop.permute.xlu1 %1310 }
0x10b5   :  { %v2300_v52 = vadd.f32 %v1311_v51, %v1303_v50  ;;  %v1967_v51 = vmov 3  }
0x10b6   :  { %1741 = vset.pattern.permute.xlu1 %v1967_v51  ;;  %1742 = vset.pattern.permute.xlu0 %v1967_v51 }
0x10b7   :  { %1868 = vtanh.f32 %v2300_v52 }
0x10b8   :  { %v1867_v53 = vpop.eup %1866 }
0x10b9   :  { %1236 = vrot.lane.b32.xlu1 %v1867_v53, %s1964_s15 }
0x10bd   :  { %v1869_v55 = vpop.eup %1868 }
0x10be   :  { %1316 = vrot.lane.b32.xlu0 %v1869_v55, %s1964_s15 }
0x112b   :  { %v1237_v56 = vpop.permute.xlu1 %1236 }
0x112c   :  { %v2305_v57 = vmul.f32 %v1237_v56, %v1220_v45 }
0x112e   :  { %1325 = vrot.lane.b32.xlu0 %v2305_v57, %s1966_s1 }
0x1130   :  { %v1317_v61 = vpop.permute.xlu0 %1316 }
0x1131   :  { %v1319_v62 = vmul.f32 %v1317_v61, %v1300_v36 }
0x1133   :  { %1321 = vrot.lane.b32.xlu2 %v1319_v62, %s1965_s20  ;;  %v2341_v62 = vld [vmem:[%s2441_s2] sm:$0x3] }
0x1134   :  { %vm504_vm11 = vcmp.eq.s32.totalorder %v2341_v62, 1  ;;  %vm955_vm12 = vcmp.eq.s32.totalorder %v2341_v62, 4  ;;  %vm653_vm13 = vcmp.eq.s32.totalorder %v2341_v62, 2 }
0x118d   :  { %v1322_v54 = vpop.permute.xlu2 %1321 }
0x118e   :  { %1724 = vmatmul.msk.f32.vlgmr.msrb.gmra.mxu2 %vm359_vm5, %v1322_v54 }
0x11a0   :  { %v1326_v3 = vpop.permute.xlu0 %1325 }
0x11a1   :  { %v1328_v7 = vsel %vm359_vm5, %v1322_v54, %v1326_v3  ;;  %v1900_v3 = vld [vmem:[%s2439_s0 + $0x2] sm:$0x3] }
0x11a2   :  { %1722 = vmatmul.msk.f32.vlgmr.msrb.gmra.mxu1 %vm426_vm10, %v1328_v7 }
0x1211   :  { %v1428_v59 = vpop.f32.mrf.mxu2 }
0x1212   :  { %v1431_v58 = vadd.f32 %v1428_v59, %v357_v6 }
0x1214   :  { %1870 = vtanh.f32 %v1431_v58  ;;  %v1725_v20 = vmul.f32 -1.442695, %v1431_v58 }
0x121a   :  { %v1871_v12 = vpop.eup %1870 }
0x121b   :  { %1454 = vrot.lane.b32.xlu2 %v1871_v12, %s1963_s14  ;;  %v640_v12 = vsub.f32 1.0, %v1900_v3 }
0x121f   :  { %v1349_v19 = vpop.f32.mrf.mxu1 }
0x1220   :  { %v1350_v4 = vadd.f32 %v2128_v15, %v1349_v19  ;;  %v1901_v19 = vld [vmem:[%s2439_s0 + $0x4] sm:$0x3] }
0x1222   :  { %1872 = vtanh.f32 %v1350_v4  ;;  %v1723_v26 = vmul.f32 -1.442695, %v1350_v4 }
0x1223   :  { %1874 = vpow2.f32 %v1725_v20 }
0x1228   :  { %v1873_v63 = vpop.eup %1872 }
0x1229   :  { %1374 = vrot.lane.b32.xlu1 %v1873_v63, %s1963_s14  ;;  %v1875_v21 = vpop.eup %1874  ;;  %v1902_v63 = vld [vmem:[%s2443_s4 + $0x4] ss:$0 sm:$0xff] }
0x122a   :  { %v1435_v22 = vadd.f32 1.0, %v1875_v21 }
0x122c   :  { %1876 = vrcp.f32 %v1435_v22  ;;  %v1447_v0 = vand.u32 2147483648, %v1435_v22  ;;  %vm1441_vm2 = vweird.f32 %v1435_v22  ;;  %v1445_v1 = vand.u32 2147483647, %v1435_v22 }
0x122d   :  { %1878 = vpow2.f32 %v1723_v26  ;;  %v1905_v26 = vld [vmem:[%s2439_s0 + $0xa] sm:$0x3] }
0x122e   :  { %v1448_v38 = vor.u32 1.1754944e-38, %v1447_v0  ;;  %vm1446_vm4 = vcmp.eq.f32.partialorder %v1445_v1, 8.507059e+37  ;;  %v1906_v0 = vld [vmem:[%s2439_s0 + $0xe] sm:$0x3] }
0x1232   :  { %v1877_v25 = vpop.eup %1876 }
0x1233   :  { %v1437_v17 = vmul.f32 %v1877_v25, %v1435_v22  ;;  %vm1442_vm1 = vweird.f32 %v1877_v25  ;;  %v1879_v10 = vpop.eup %1878 }
0x1234   :  { %vm1443_vm3 = vmor %vm1441_vm2, %vm1442_vm1  ;;  %v1355_v28 = vadd.f32 1.0, %v1879_v10 }
0x1235   :  { %v1438_v23 = vsub.f32 1.0, %v1437_v17  ;;  %v793_v17 = vsub.f32 1.0, %v1901_v19 }
0x1236   :  { %1880 = vrcp.f32 %v1355_v28  ;;  %v1367_v16 = vand.u32 2147483648, %v1355_v28  ;;  %vm1361_vm7 = vweird.f32 %v1355_v28  ;;  %v1365_v32 = vand.u32 2147483647, %v1355_v28 }
0x1237   :  { %v1439_v24 = vmul.f32 %v1877_v25, %v1438_v23  ;;  %v1903_v23 = vld [vmem:[%s2439_s0 + $0x6] sm:$0x3] }
0x1238   :  { %v1368_v35 = vor.u32 1.1754944e-38, %v1367_v16  ;;  %vm1366_vm9 = vcmp.eq.f32.partialorder %v1365_v32, 8.507059e+37 }
0x1239   :  { %v1440_v27 = vadd.f32 %v1877_v25, %v1439_v24  ;;  %v1904_v24 = vld [vmem:[%s2439_s0 + $0x8] sm:$0x3] }
0x123b   :  { %v1444_v15 = vsel %vm1443_vm3, %v1877_v25, %v1440_v27  ;;  %v1240_v27 = vsub.f32 1.0, %v1905_v26  ;;  %vm806_vm3 = vcmp.eq.s32.totalorder %v2341_v62, 3 }
0x123c   :  { %v1449_v2 = vsel %vm1446_vm4, %v1448_v38, %v1444_v15  ;;  %v1881_v37 = vpop.eup %1880  ;;  %vm1104_vm4 = vcmp.eq.s32.totalorder %v2341_v62, 5 }
0x123d   :  { %v1357_v29 = vmul.f32 %v1881_v37, %v1355_v28  ;;  %vm1362_vm6 = vweird.f32 %v1881_v37  ;;  %v1452_v42 = vmul.f32 %v1449_v2, %v2300_v52  ;;  %v1968_v52 = vmov 0  }
0x123e   :  { %vm1363_vm8 = vmor %vm1361_vm7, %vm1362_vm6  ;;  %1743 = vset.pattern.permute.xlu2 %v1968_v52  ;;  %v505_v54 = vsel %vm504_vm11, 1, %v1968_v52  ;;  %v956_v25 = vsel %vm955_vm12, 1, %v1968_v52  ;;  %vm1253_vm6 = vcmp.eq.s32.totalorder %v2341_v62, 6  ;;  %vm1551_vm7 = vcmp.eq.s32.totalorder %v2341_v62, 8 }
0x123f   :  { %v1358_v30 = vsub.f32 1.0, %v1357_v29 }
0x1241   :  { %v1359_v36 = vmul.f32 %v1881_v37, %v1358_v30 }
0x1243   :  { %v1360_v31 = vadd.f32 %v1881_v37, %v1359_v36 }
0x1245   :  { %v1364_v33 = vsel %vm1363_vm8, %v1881_v37, %v1360_v31  ;;  %vm1402_vm8 = vcmp.eq.s32.totalorder %v2341_v62, 7 }
0x1246   :  { %v1369_v40 = vsel %vm1366_vm9, %v1368_v35, %v1364_v33  ;;  %v942_v35 = vsub.f32 1.0, %v1903_v23 }
0x1247   :  { %v1372_v46 = vmul.f32 %v1369_v40, %v2296_v49  ;;  %v1899_v49 = vld [vmem:[%s2439_s0] sm:$0x3] }
0x1248   :  { %v487_v22 = vsub.f32 1.0, %v1899_v49 }
0x1275   :  { %v1455_v9 = vpop.permute.xlu2 %1454 }
0x1276   :  { %v1457_v5 = vmul.f32 %v1455_v9, %v1449_v2  ;;  %v654_v9 = vsel %vm653_vm13, 1, %v1968_v52 }
0x1278   :  { %1459 = vrot.lane.b32.xlu1 %v1457_v5, %s1964_s15 }
0x129b   :  { %v1375_v39 = vpop.permute.xlu1 %1374 }
0x129c   :  { %v1377_v41 = vmul.f32 %v1375_v39, %v1369_v40 }
0x129e   :  { %1379 = vrot.lane.b32.xlu0 %v1377_v41, %s1964_s15 }
0x12ea   :  { %v1460_v43 = vpop.permute.xlu1 %1459 }
0x12eb   :  { %v1462_v44 = vadd.f32 %v1460_v43, %v1452_v42 }
0x12ed   :  { %1882 = vtanh.f32 %v1462_v44 }
0x12f3   :  { %v1883_v45 = vpop.eup %1882 }
0x12f4   :  { %1465 = vrot.lane.b32.xlu0 %v1883_v45, %s1964_s15  ;;  %v1091_v45 = vsub.f32 1.0, %v1904_v24 }
0x1310   :  { %v1380_v47 = vpop.permute.xlu0 %1379 }
0x1311   :  { %v2325_v48 = vadd.f32 %v1380_v47, %v1372_v46  ;;  %v807_v46 = vsel %vm806_vm3, 1, %v1968_v52  ;;  %v1907_v47 = vld [vmem:[%s2439_s0 + $0xc] sm:$0x3] }
0x1313   :  { %1884 = vtanh.f32 %v2325_v48 }
0x1319   :  { %v1885_v50 = vpop.eup %1884 }
0x131a   :  { %1385 = vrot.lane.b32.xlu2 %v1885_v50, %s1964_s15  ;;  %v1389_v50 = vsub.f32 1.0, %v1907_v47 }
0x1366   :  { %v1466_v53 = vpop.permute.xlu0 %1465 }
0x1367   :  { %v1468_v55 = vmul.f32 %v1466_v53, %v1449_v2  ;;  %v1538_v53 = vsub.f32 1.0, %v1906_v0 }
0x1369   :  { %1470 = vrot.lane.b32.xlu1 %v1468_v55, %s1965_s20  ;;  %v1254_v55 = vsel %vm1253_vm6, 1, %v1968_v52 }
0x1371   :  { %495 = vperm.xlu1 %1741, %v1899_v49   ;;  %v1552_v49 = vsel %vm1551_vm7, 1, %v1968_v52 }
0x1374   :  { %v1386_v56 = vpop.permute.xlu2 %1385 }
0x1375   :  { %v2336_v61 = vmul.f32 %v1386_v56, %v1369_v40 }
0x1377   :  { %1474 = vrot.lane.b32.xlu2 %v2336_v61, %s1966_s1 }
0x137f   :  { %507 = vperm.xlu2 %1743, %v505_v54  }
0x1387   :  { %1744 = vset.pattern.permute.xlu2 %v1967_v51 }
0x1388   :  { %648 = vperm.xlu2 %1744, %v1900_v3  }
0x13d1   :  { %v1475_v7 = vpop.permute.xlu2 %1474 }
0x13d9   :  { %v508_v40 = vpop.permute.xlu2 %507 }
0x13da   :  { %vm509_vm2 = vcmp.eq.s32.totalorder %v508_v40, 1 }
0x13db   :  { %v1471_v13 = vpop.permute.xlu1 %1470 }
0x13dc   :  { %v1477_v6 = vsel %vm359_vm5, %v1471_v13, %v1475_v7  ;;  %v1403_v13 = vsel %vm1402_vm8, 1, %v1968_v52 }
0x13dd   :  { %1726 = vmatmul.msk.f32.vlgmr.msrb.gmra.mxu0 %vm426_vm10, %v1477_v6 }
0x13e3   :  { %v496_v59 = vpop.permute.xlu1 %495 }
0x13e4   :  { %v498_v58 = vmul.f32 %v496_v59, %v2153_v8 }
0x13e6   :  { %500 = vrot.lane.b32.xlu1 %v498_v58, %s1966_s1 }
0x13ee   :  { %643 = vperm.xlu1 %1741, %v640_v12  }
0x13f6   :  { %801 = vperm.xlu1 %1741, %v1901_v19  }
0x13fe   :  { %1745 = vset.pattern.permute.xlu1 %v1968_v52 }
0x13ff   :  { %656 = vperm.xlu1 %1745, %v654_v9  }
0x1407   :  { %1747 = vset.pattern.permute.xlu1 %v1967_v51 }
0x1458   :  { %v501_v42 = vpop.permute.xlu1 %500 }
0x145a   :  { %v1498_v4 = vpop.f32.mrf.mxu0 }
0x145b   :  { %v1499_v20 = vadd.f32 %v1902_v63, %v1498_v4 }
0x145d   :  { %1886 = vtanh.f32 %v1499_v20  ;;  %v1727_v1 = vmul.f32 -1.442695, %v1499_v20 }
0x145f   :  { %1888 = vpow2.f32 %v1727_v1 }
0x1460   :  { %v644_v6 = vpop.permute.xlu1 %643 }
0x1463   :  { %v1887_v21 = vpop.eup %1886 }
0x1464   :  { %1523 = vrot.lane.b32.xlu0 %v1887_v21, %s1963_s14 }
0x1465   :  { %v1889_v15 = vpop.eup %1888 }
0x1466   :  { %v1504_v38 = vadd.f32 1.0, %v1889_v15 }
0x1468   :  { %1890 = vrcp.f32 %v1504_v38  ;;  %v1516_v29 = vand.u32 2147483648, %v1504_v38  ;;  %vm1510_vm15 = vweird.f32 %v1504_v38  ;;  %v1514_v30 = vand.u32 2147483647, %v1504_v38  ;;  %v802_v59 = vpop.permute.xlu1 %801 }
0x146a   :  { %v1517_v31 = vor.u32 1.1754944e-38, %v1516_v29  ;;  %vm1515_vm1 = vcmp.eq.f32.partialorder %v1514_v30, 8.507059e+37 }
0x146c   :  { %490 = vperm.xlu0 %1742, %v487_v22  }
0x146e   :  { %v1891_v2 = vpop.eup %1890 }
0x146f   :  { %v1506_v5 = vmul.f32 %v1891_v2, %v1504_v38  ;;  %vm1511_vm14 = vweird.f32 %v1891_v2 }
0x1470   :  { %vm1512_vm0 = vmor %vm1510_vm15, %vm1511_vm14 }
0x1471   :  { %v1507_v10 = vsub.f32 1.0, %v1506_v5  ;;  %v657_v58 = vpop.permute.xlu1 %656 }
0x1472   :  { %vm658_vm9 = vcmp.eq.s32.totalorder %v657_v58, 1  ;;  %v1760_v58 = vld [vmem:[%s2443_s4 + $0x6] ss:$0 sm:$0xff] }
0x1473   :  { %v1508_v28 = vmul.f32 %v1891_v2, %v1507_v10 }
0x1474   :  { %1748 = vset.pattern.permute.xlu0 %v1968_v52 }
0x1475   :  { %958 = vperm.xlu0 %1748, %v956_v25   ;;  %v1509_v37 = vadd.f32 %v1891_v2, %v1508_v28 }
0x1477   :  { %v1513_v36 = vsel %vm1512_vm0, %v1891_v2, %v1509_v37  ;;  %v804_v2 = vmul.f32 %v802_v59, %v2226_v11  ;;  %v1621_v59 = vld [vmem:[#allocation2 + $0x200] sm:$0xff] }
0x1478   :  { %v2383_v32 = vsel %vm1515_vm1, %v1517_v31, %v1513_v36 }
0x1479   :  { %v1521_v56 = vmul.f32 %v2383_v32, %v2325_v48 }
0x147d   :  { %1749 = vset.pattern.permute.xlu0 %v1967_v51 }
0x147e   :  { %796 = vperm.xlu0 %1749, %v793_v17   ;;  %v1560_v17 = vld [vmem:[#allocation2 + $0x188] sm:$0xff] }
0x147f   :  { %1582 = vmatpush.msrb.mxu3 %v1560_v17 }
0x1486   :  { %950 = vperm.xlu0 %1749, %v1903_v23   ;;  %v1559_v23 = vld [vmem:[#allocation2 + $0x180] sm:$0xff] }
0x1487   :  { %1583 = vmatpush.msrb.mxu3 %v1559_v23 }
0x148e   :  { %1099 = vperm.xlu0 %1749, %v1904_v24  }
0x1496   :  { %1243 = vperm.xlu0 %1749, %v1240_v27   ;;  %v646_v27 = vmul.f32 %v644_v6, %v2153_v8  ;;  %v1622_v6 = vld [vmem:[#allocation2 + $0x208] sm:$0xff] }
0x149e   :  { %1546 = vperm.xlu0 %1749, %v1906_v0  }
0x14a6   :  { %1753 = vset.pattern.permute.xlu0 %v1968_v52 }
0x14d6   :  { %v1524_v16 = vpop.permute.xlu0 %1523 }
0x14d7   :  { %v1526_v33 = vmul.f32 %v1524_v16, %v2383_v32 }
0x14d9   :  { %1528 = vrot.lane.b32.xlu2 %v1526_v33, %s1964_s15 }
0x14de   :  { %v491_v39 = vpop.permute.xlu0 %490 }
0x14df   :  { %v493_v41 = vmul.f32 %v491_v39, %v2055_v34  ;;  %v1105_v34 = vsel %vm1104_vm4, 1, %v1968_v52 }
0x14e1   :  { %v503_v43 = vadd.f32 %v501_v42, %v493_v41  ;;  %945 = vperm.xlu2 %1744, %v942_v35  }
0x14e3   :  { %v510_v44 = vsel %vm509_vm2, %v503_v43, 0.0 }
0x14e4   :  { %660 = vrot.lane.b32.xlu1 %v510_v44, %s1964_s15 }
0x14e7   :  { %v959_v19 = vpop.permute.xlu0 %958 }
0x14e8   :  { %vm960_vm12 = vcmp.eq.s32.totalorder %v959_v19, 1 }
0x14e9   :  { %1094 = vperm.xlu2 %1744, %v1091_v45  }
0x14ec   :  { %1248 = vperm.xlu1 %1747, %v1905_v26  }
0x14f0   :  { %v797_v20 = vpop.permute.xlu0 %796 }
0x14f1   :  { %1746 = vset.pattern.permute.xlu2 %v1968_v52  ;;  %v799_v15 = vmul.f32 %v797_v20, %v2196_v18 }
0x14f2   :  { %809 = vperm.xlu2 %1746, %v807_v46  }
0x14f3   :  { %v805_v29 = vadd.f32 %v804_v2, %v799_v15 }
0x14f4   :  { %1392 = vperm.xlu1 %1747, %v1389_v50  }
0x14f8   :  { %v951_v22 = vpop.permute.xlu0 %950 }
0x14f9   :  { %v953_v30 = vmul.f32 %v951_v22, %v2256_v14 }
0x14fa   :  { %1750 = vset.pattern.permute.xlu2 %v1967_v51  ;;  %v649_v51 = vpop.permute.xlu2 %648 }
0x14fb   :  { %1397 = vperm.xlu2 %1750, %v1907_v47   ;;  %v651_v1 = vmul.f32 %v649_v51, %v2196_v18  ;;  %v1759_v51 = vld [vmem:[%s2443_s4 + $0x5] ss:$0 sm:$0xff] }
0x14fc   :  { %1751 = vset.pattern.permute.xlu1 %v1968_v52 }
0x14fd   :  { %1107 = vperm.xlu1 %1751, %v1105_v34   ;;  %v652_v38 = vadd.f32 %v651_v1, %v646_v27 }
0x1500   :  { %v1100_v62 = vpop.permute.xlu0 %1099 }
0x1501   :  { %v1102_v18 = vmul.f32 %v1100_v62, %v2280_v60 }
0x1503   :  { %1541 = vperm.xlu2 %1750, %v1538_v53   ;;  %v1593_v53 = vld [vmem:[#allocation2 + $0x1d8] sm:$0xff] }
0x1504   :  { %1611 = vmatpush.msra.mxu1 %v1593_v53 }
0x1505   :  { %1256 = vperm.xlu1 %1751, %v1254_v55   ;;  %v1592_v55 = vld [vmem:[#allocation2 + $0x1d0] sm:$0xff] }
0x1506   :  { %1612 = vmatpush.msra.mxu1 %v1592_v55 }
0x1508   :  { %v1244_v0 = vpop.permute.xlu0 %1243 }
0x150b   :  { %1752 = vset.pattern.permute.xlu2 %v1968_v52 }
0x150d   :  { %1554 = vperm.xlu1 %1751, %v1552_v49   ;;  %v1590_v49 = vld [vmem:[#allocation2 + $0x1c0] sm:$0xff] }
0x1510   :  { %v1547_v33 = vpop.permute.xlu0 %1546 }
0x1533   :  { %v1529_v54 = vpop.permute.xlu2 %1528 }
0x1534   :  { %v1531_v3 = vadd.f32 %v1529_v54, %v1521_v56 }
0x1536   :  { %1892 = vtanh.f32 %v1531_v3 }
0x153b   :  { %v946_v12 = vpop.permute.xlu2 %945 }
0x153c   :  { %v1893_v7 = vpop.eup %1892  ;;  %v948_v10 = vmul.f32 %v946_v12, %v2226_v11  ;;  %v1246_v11 = vmul.f32 %v1244_v0, %v2280_v60 }
0x153d   :  { %1534 = vrot.lane.b32.xlu2 %v1893_v7, %s1964_s15  ;;  %v1624_v7 = vld [vmem:[#allocation2 + $0x218] sm:$0xff] }
0x153e   :  { %v954_v35 = vadd.f32 %v953_v30, %v948_v10  ;;  %1642 = vmatpush.msra.mxu2 %v1624_v7 }
0x1543   :  { %v1095_v63 = vpop.permute.xlu2 %1094 }
0x1544   :  { %v1097_v8 = vmul.f32 %v1095_v63, %v2256_v14  ;;  %v1761_v63 = vld [vmem:[%s2443_s4 + $0x7] ss:$0 sm:$0xff] }
0x1545   :  { %1405 = vperm.xlu2 %1752, %v1403_v13   ;;  %v1623_v13 = vld [vmem:[#allocation2 + $0x210] sm:$0xff] }
0x1546   :  { %1643 = vmatpush.msra.mxu2 %v1623_v13 }
0x1548   :  { %1644 = vmatpush.msra.mxu2 %v1622_v6 }
0x154a   :  { %1645 = vmatpush.msra.mxu2 %v1621_v59 }
0x154c   :  { %v810_v21 = vpop.permute.xlu2 %809 }
0x154d   :  { %vm811_vm11 = vcmp.eq.s32.totalorder %v810_v21, 1 }
0x1555   :  { %v1398_v24 = vpop.permute.xlu2 %1397 }
0x1556   :  { %v661_v4 = vpop.permute.xlu1 %660  ;;  %v1400_v40 = vmul.f32 %v1398_v24, %v2336_v61 }
0x1557   :  { %v663_v28 = vsel %vm658_vm9, %v652_v38, %v661_v4 }
0x1558   :  { %v812_v31 = vsel %vm811_vm11, %v805_v29, %v663_v28 }
0x1559   :  { %v961_v42 = vsel %vm960_vm12, %v954_v35, %v812_v31 }
0x155d   :  { %v1542_v26 = vpop.permute.xlu2 %1541 }
0x155e   :  { %v1249_v48 = vpop.permute.xlu1 %1248  ;;  %v1544_v14 = vmul.f32 %v1542_v26, %v2336_v61  ;;  %v1591_v61 = vld [vmem:[#allocation2 + $0x1c8] sm:$0xff] }
0x155f   :  { %v1251_v36 = vmul.f32 %v1249_v48, %v2305_v57  ;;  %1613 = vmatpush.msra.mxu1 %v1591_v61 }
0x1561   :  { %v1252_v41 = vadd.f32 %v1251_v36, %v1246_v11  ;;  %1614 = vmatpush.msra.mxu1 %v1590_v49 }
0x1566   :  { %v1393_v25 = vpop.permute.xlu1 %1392 }
0x1567   :  { %v1395_v16 = vmul.f32 %v1393_v25, %v2305_v57 }
0x1569   :  { %v1401_v44 = vadd.f32 %v1400_v40, %v1395_v16 }
0x156f   :  { %v1108_v52 = vpop.permute.xlu1 %1107 }
0x1570   :  { %vm1109_vm13 = vcmp.eq.s32.totalorder %v1108_v52, 1 }
0x1577   :  { %v1257_v9 = vpop.permute.xlu1 %1256 }
0x1578   :  { %vm1258_vm14 = vcmp.eq.s32.totalorder %v1257_v9, 1 }
0x157f   :  { %v1555_v43 = vpop.permute.xlu1 %1554 }
0x1580   :  { %vm1556_vm0 = vcmp.eq.s32.totalorder %v1555_v43, 1 }
0x1597   :  { %v1535_v5 = vpop.permute.xlu2 %1534 }
0x1598   :  { %v1537_v37 = vmul.f32 %v1535_v5, %v2383_v32  ;;  %v1103_v32 = vadd.f32 %v1102_v18, %v1097_v8 }
0x159a   :  { %v1549_v39 = vmul.f32 %v1547_v33, %v1537_v37  ;;  %v1110_v45 = vsel %vm1109_vm13, %v1103_v32, %v961_v42 }
0x159b   :  { %v1259_v47 = vsel %vm1258_vm14, %v1252_v41, %v1110_v45 }
0x159c   :  { %v1550_v57 = vadd.f32 %v1549_v39, %v1544_v14 }
0x159f   :  { %v1406_v46 = vpop.permute.xlu2 %1405 }
0x15a0   :  { %vm1407_vm15 = vcmp.eq.s32.totalorder %v1406_v46, 1 }
0x15a1   :  { %v1408_v60 = vsel %vm1407_vm15, %v1401_v44, %v1259_v47 }
0x15a2   :  { %v1557_v50 = vsel %vm1556_vm0, %v1550_v57, %v1408_v60 }
0x15a3   :  { %1564 = vrot.lane.b32.xlu2 %v1557_v50, %s1965_s20 }
0x15fd   :  { %v1565_v34 = vpop.permute.xlu2 %1564 }
0x15fe   :  { %1728 = vmatmul.msk.f32.vlgmr.msrb.gmra.mxu3 %vm359_vm5, %v1565_v34  ;;  %vm1650_vm5 = vcmask 41984  }
0x1681   :  { %v1585_v56 = vpop.f32.mrf.mxu3 }
0x1682   :  { %v1586_v54 = vadd.f32 %v1759_v51, %v1585_v56 }
0x1684   :  { %1894 = vtanh.f32 %v1586_v54 }
0x168a   :  { %v1895_v3 = vpop.eup %1894 }
0x168b   :  { %1729 = vmatmul.msk.f32.vlgmr.msra.gmra.mxu1 %vm426_vm10, %v1895_v3 }
0x1708   :  { %v1616_v12 = vpop.f32.mrf.mxu1 }
0x1709   :  { %v1617_v19 = vadd.f32 %v1760_v58, %v1616_v12 }
0x170b   :  { %1896 = vtanh.f32 %v1617_v19 }
0x1711   :  { %v1897_v4 = vpop.eup %1896 }
0x1712   :  { %1730 = vmatmul.msk.f32.vlgmr.msra.gmra.mxu2 %vm426_vm10, %v1897_v4 }
0x1795   :  { %v1647_v20 = vpop.f32.mrf.mxu2 }
0x1796   :  { %v1648_v48 = vadd.f32 %v1761_v63, %v1647_v20 }
0x1798   :  { %1651 = vst.msk [vmem:[#allocation5] sm:$0x3] %vm1650_vm5, %v1648_v48 }
0x1799   :  { %1662 = dma.vmem_to_hbm [thread:$0]  %s1658_s28, 32, %s1660_s6, [#allocation4]  }
0x179a   :  { %1958 = dma.done.wait [#allocation4], 32  }
0x179b   :  { %1959 = vsyncadd [#allocation4], 4294967264 }
0x179c   :  { %1667 = vsyncpa [#allocation3], 1 }
0x179d   :  { %1668 = vsyncpa [#allocation4], 1 }

</bundles_post_ra>
